<compile_context>
chip_gen: v5e
topology: v5e:2x2
jax: 0.10.0
libtpu: 0.0.40
codegen_flags: <defaults>
</compile_context>

<pallas_src>
from functools import partial

import numpy as np
import jax
import jax.numpy as jnp
from jax.experimental import pallas as pl
from jax.experimental.pallas import tpu as pltpu


# ------------------------- constants slab layout ----------------------------
# One (SLAB_ROWS, 128) f32 array holds every prepared weight/constant.
OFF_A1, OFF_A2, OFF_A3 = 0, 384, 768          # stacked-K conv matrices (384 rows each)
OFF_P = 1152                                  # BN mean/var projection  (128 rows)
OFF_W1 = 1280                                 # fc1, one 128x128 block per ho (384 rows)
OFF_W2 = 1664                                 # fc2 weight, lane-padded (128 rows)
OFF_VEC = 1792                                # 8 rows of (1,128) constants
SLAB_ROWS = 1800
K_CB1, K_CB2, K_CB3, K_GAMMA, K_BETA, K_FB1, K_FB2 = range(7)


# ------------------------------ fused kernel --------------------------------

def _encoder_kernel(x_ref, c_ref, o_ref, xp_ref, y1p_ref, y2p_ref, *, B, lat, eps):
    f32 = jnp.float32
    inv_n = 1.0 / float(B * 7 * 7)            # BatchNorm2d batch-stat count (biased var)

    def crow(k):                              # one (1,128) constant row from the slab
        return c_ref[OFF_VEC + k: OFF_VEC + k + 1, :]

    def conv_layer(src_ref, pitch, h_out, a_off, bias_k):
        """3x3 / stride-2 conv as ONE K=384 MXU matmul per image.

        The three kernel-row operands are static stride-2 sublane reads from
        the H-zero-padded scratch (no gather matmuls), lane-concatenated into
        a (h_out, 3*128) block; A folds the width shift, width zero padding
        and the input-channel contraction of all three kernel rows.
        """
        a = c_ref[a_off: a_off + 384, :]                       # (384, 128)
        bias = crow(bias_k)
        outs = []
        for b in range(B):
            rows = jnp.concatenate(
                [src_ref[pl.ds(b * pitch + i, h_out, stride=2), :] for i in range(3)],
                axis=1)                                        # (h_out, 384)
            outs.append(jnp.dot(rows, a, preferred_element_type=f32) + bias)
        return outs                                            # B x (h_out, 128)

    # --- stage the input into a lane-dense, per-image H-padded scratch -------
    xp_ref[...] = jnp.zeros_like(xp_ref)       # row 0 of each image = top zero pad
    y1p_ref[...] = jnp.zeros_like(y1p_ref)     # row 0 of each image = top zero pad
    for b in range(B):
        xp_ref[b * 32 + 1: b * 32 + 29, 0:28] = x_ref[b]

    # --- Conv2d(1, 8, 3, s=2, p=1) + ReLU -------------------------------------
    y1 = conv_layer(xp_ref, 32, 14, OFF_A1, K_CB1)             # B x (14, 128)
    for b in range(B):
        y1p_ref[b * 16 + 1: b * 16 + 15, :] = jnp.maximum(y1[b], 0.0)

    # --- Conv2d(8, 16, 3, s=2, p=1) + BatchNorm2d(16, batch stats) + ReLU -----
    y2 = conv_layer(y1p_ref, 16, 7, OFF_A2, K_CB2)             # B x (7, 128)
    p_mat = c_ref[OFF_P: OFF_P + 128, :]                       # P = R @ R.T (prep-time)
    col_sum = y2[0].sum(axis=0, keepdims=True)
    for b in range(1, B):
        col_sum = col_sum + y2[b].sum(axis=0, keepdims=True)
    mean = jnp.dot(col_sum, p_mat, preferred_element_type=f32) * inv_n     # (1,128)
    d = [t - mean for t in y2]
    sq_sum = (d[0] * d[0]).sum(axis=0, keepdims=True)
    for b in range(1, B):
        sq_sum = sq_sum + (d[b] * d[b]).sum(axis=0, keepdims=True)
    var = jnp.dot(sq_sum, p_mat, preferred_element_type=f32) * inv_n       # (1,128)
    scale = crow(K_GAMMA) * jax.lax.rsqrt(var + eps)
    beta = crow(K_BETA)
    for b in range(B):
        y2p_ref[b * 8: b * 8 + 7, :] = jnp.maximum(d[b] * scale + beta, 0.0)

    # --- Conv2d(16, 32, 3, s=2, p=0) + ReLU ------------------------------------
    y3 = [jnp.maximum(t, 0.0) for t in conv_layer(y2p_ref, 8, 3, OFF_A3, K_CB3)]

    # --- Flatten (NCHW order folded into W1 at prep time) + fc1/ReLU + fc2 -----
    w1 = [c_ref[OFF_W1 + ho * 128: OFF_W1 + (ho + 1) * 128, :] for ho in range(3)]
    w2 = c_ref[OFF_W2: OFF_W2 + 128, 0:lat]
    fb1 = crow(K_FB1)
    fb2 = crow(K_FB2)[:, 0:lat]
    for b in range(B):
        h = fb1
        for ho in range(3):
            h = h + jnp.dot(y3[b][ho:ho + 1, :], w1[ho], preferred_element_type=f32)
        h = jnp.maximum(h, 0.0)
        # (B, lat) output: masked store knowingly accepted (tiny, avoids an
        # extra XLA slice op outside the kernel).
        o_ref[b:b + 1, :] = (jnp.dot(h, w2, preferred_element_type=f32) + fb2
                             ).astype(o_ref.dtype)


# ------------------------ one-time parameter prep ----------------------------

def _conv_a_block(w, w_in, pad):
    """Stacked-K conv matrix (3*128, 128).

    Block i (rows [i*128, (i+1)*128)) maps the lane-dense input layout
    (w_idx*C_in + c_in, zero-padded to 128) of kernel row i to the lane-dense
    output layout (w_out*C_out + c_out, zero-padded to 128), folding the width
    shift, width zero padding and the input-channel contraction.
    """
    w = np.asarray(w, np.float32)
    c_out, c_in, kh, kw = w.shape
    w_out = (w_in + 2 * pad - kw) // 2 + 1
    a = np.zeros((kh, 128, 128), np.float32)
    for i in range(kh):
        for wo in range(w_out):
            for j in range(kw):
                ws = 2 * wo + j - pad
                if 0 <= ws < w_in:
                    for ci in range(c_in):
                        a[i, ws * c_in + ci, wo * c_out:(wo + 1) * c_out] += w[:, ci, i, j]
    return a.reshape(3 * 128, 128)


def prepare_params(params):
    """Run ONCE (batch-independent): torch-layout params -> one (1800,128) slab."""
    f32 = np.float32
    lat = int(params["fc2_w"].shape[0])
    assert lat <= 128, "latent dim must fit one lane tile"
    assert params["fc1_w"].shape == (128, 3 * 3 * 32)

    a1 = _conv_a_block(params["conv1_w"], 28, 1)
    a2 = _conv_a_block(params["conv2_w"], 14, 1)
    a3 = _conv_a_block(params["conv3_w"], 7, 0)

    # BN: channel <-> (wo, channel)-lane projection, precomputed as P = R @ R.T
    r = np.zeros((128, 16), f32)
    for wo in range(7):
        for c in range(16):
            r[wo * 16 + c, c] = 1.0
    p = r @ r.T

    # fc1: fold torch's NCHW flatten order (c, ho, wo) into one 128x128 block / ho
    fc1_w = np.asarray(params["fc1_w"], f32)                  # (128, 288)
    w1 = np.zeros((3, 128, 128), f32)
    for ho in range(3):
        for wo in range(3):
            for c in range(32):
                w1[ho, wo * 32 + c, :] = fc1_w[:, c * 9 + ho * 3 + wo]

    w2 = np.zeros((128, 128), f32)
    w2[:, :lat] = np.asarray(params["fc2_w"], f32).T

    vecs = np.zeros((8, 128), f32)
    vecs[K_CB1, :112] = np.tile(np.asarray(params["conv1_b"], f32), 14)
    vecs[K_CB2, :112] = np.tile(np.asarray(params["conv2_b"], f32), 7)
    vecs[K_CB3, :96] = np.tile(np.asarray(params["conv3_b"], f32), 3)
    vecs[K_GAMMA] = r @ np.asarray(params["bn_g"], f32)       # gamma broadcast to lanes
    vecs[K_BETA] = r @ np.asarray(params["bn_b"], f32)        # beta broadcast to lanes
    vecs[K_FB1] = np.asarray(params["fc1_b"], f32)
    vecs[K_FB2, :lat] = np.asarray(params["fc2_b"], f32)

    slab = np.zeros((SLAB_ROWS, 128), f32)
    slab[OFF_A1:OFF_A1 + 384] = a1
    slab[OFF_A2:OFF_A2 + 384] = a2
    slab[OFF_A3:OFF_A3 + 384] = a3
    slab[OFF_P:OFF_P + 128] = p
    slab[OFF_W1:OFF_W1 + 384] = w1.reshape(384, 128)
    slab[OFF_W2:OFF_W2 + 128] = w2
    slab[OFF_VEC:OFF_VEC + 8] = vecs
    return {"slab": jnp.asarray(slab), "lat": lat}


# --------------------------------- forward -----------------------------------

def encoder_forward(slab, x_nchw, *, lat):
    B = x_nchw.shape[0]
    assert x_nchw.shape[1:] == (1, 28, 28), x_nchw.shape
    x3d = x_nchw.astype(jnp.float32).reshape(B, 28, 28)

    return pl.pallas_call(
        partial(_encoder_kernel, B=B, lat=lat, eps=1e-5),
        out_shape=jax.ShapeDtypeStruct((B, lat), jnp.float32),
        in_specs=[pl.BlockSpec(memory_space=pltpu.MemorySpace.VMEM),   # image
                  pl.BlockSpec(memory_space=pltpu.MemorySpace.VMEM)],  # constants slab
        out_specs=pl.BlockSpec(memory_space=pltpu.MemorySpace.VMEM),
        scratch_shapes=[pltpu.VMEM((B * 32, 128), jnp.float32),   # conv1 input (H-padded)
                        pltpu.VMEM((B * 16, 128), jnp.float32),   # conv2 input (H-padded)
                        pltpu.VMEM((B * 8, 128), jnp.float32)],   # conv3 input
    )(x3d, slab)


# -------------------------- params & pure-JAX ref -----------------------------

def init_params(key, lat_dim):
    ks = jax.random.split(key, 10)

    def w(k, shape, scale):
        return (scale * jax.random.normal(k, shape)).astype(jnp.float32)

    return {
        "conv1_w": w(ks[0], (8, 1, 3, 3), 0.30),
        "conv1_b": w(ks[1], (8,), 0.10),
        "conv2_w": w(ks[2], (16, 8, 3, 3), 0.10),
        "conv2_b": w(ks[3], (16,), 0.10),
        "bn_g": jnp.ones((16,), jnp.float32),
        "bn_b": jnp.zeros((16,), jnp.float32),
        "conv3_w": w(ks[4], (32, 16, 3, 3), 0.08),
        "conv3_b": w(ks[5], (32,), 0.10),
        "fc1_w": w(ks[6], (128, 3 * 3 * 32), 0.05),   # torch Linear layout (out, in)
        "fc1_b": w(ks[7], (128,), 0.05),
        "fc2_w": w(ks[8], (lat_dim, 128), 0.05),
        "fc2_b": w(ks[9], (lat_dim,), 0.05),
    }


def ref_forward(params, x_nchw):
    def conv(x, w, b, stride, pad):
        y = jax.lax.conv_general_dilated(
            x, w, (stride, stride), [(pad, pad), (pad, pad)],
            dimension_numbers=("NCHW", "OIHW", "NCHW"))
        return y + b[None, :, None, None]

    x = jnp.maximum(conv(x_nchw, params["conv1_w"], params["conv1_b"], 2, 1), 0.0)
    x = conv(x, params["conv2_w"], params["conv2_b"], 2, 1)
    mean = jnp.mean(x, axis=(0, 2, 3), keepdims=True)
    var = jnp.mean((x - mean) ** 2, axis=(0, 2, 3), keepdims=True)
    x = (x - mean) * jax.lax.rsqrt(var + 1e-5) * params["bn_g"][None, :, None, None] \
        + params["bn_b"][None, :, None, None]
    x = jnp.maximum(x, 0.0)
    x = jnp.maximum(conv(x, params["conv3_w"], params["conv3_b"], 2, 0), 0.0)
    flat = x.reshape(x.shape[0], -1)
    h = jnp.maximum(flat @ params["fc1_w"].T + params["fc1_b"], 0.0)
    return h @ params["fc2_w"].T + params["fc2_b"]


if __name__ == "__main__":
    lat_dim = 16
    key = jax.random.PRNGKey(0)
    kx, kp = jax.random.split(key)

    # Input shape implied by the module's Linear(3*3*32, ...): (B, 1, 28, 28)
    x = jax.random.normal(kx, (2, 1, 28, 28), jnp.float32)
    params = init_params(kp, lat_dim)

    prep = prepare_params(params)                       # batch-independent weight prep
    fwd = jax.jit(partial(encoder_forward, lat=prep["lat"]))
    out = jax.block_until_ready(fwd(prep["slab"], x))
    assert out.shape == (2, lat_dim), out.shape

    ref = jax.block_until_ready(ref_forward(params, x))
    err = float(jnp.max(jnp.abs(out - ref)))
    # slightly looser than 1e-4: f32 reassociation from the fused matmul form
    assert jnp.allclose(out, ref, rtol=2e-4, atol=2e-4), err
    print("KERNEL_OK")
</pallas_src>

<mosaic_0001>
module attributes {stable_mosaic.version = 11 : i64} {
  func.func @_encoder_kernel(%arg0: memref<2x28x28xf32, #tpu.memory_space<vmem>>, %arg1: memref<1800x128xf32, #tpu.memory_space<vmem>>, %arg2: memref<2x16xf32, #tpu.memory_space<vmem>>, %arg3: memref<64x128xf32, #tpu.memory_space<vmem>>, %arg4: memref<32x128xf32, #tpu.memory_space<vmem>>, %arg5: memref<16x128xf32, #tpu.memory_space<vmem>>) attributes {dimension_semantics = [], scalar_prefetch = 0 : i64, scratch_operands = 3 : i64, tpu.core_type = #tpu.core_type<tc>} {
    %cst = arith.constant 0.000000e+00 : f32
    %0 = vector.broadcast %cst : f32 to vector<64x128xf32>
    %c0 = arith.constant 0 : index
    %c0_0 = arith.constant 0 : index
    %1 = vector.load %arg3[%c0, %c0_0] : memref<64x128xf32, #tpu.memory_space<vmem>>, vector<64x128xf32>
    tpu.vector_store %arg3[%c0, %c0_0], %0 {strides = array<i32>} : memref<64x128xf32, #tpu.memory_space<vmem>>, vector<64x128xf32>,
    %cst_1 = arith.constant 0.000000e+00 : f32
    %2 = vector.broadcast %cst_1 : f32 to vector<32x128xf32>
    %c0_2 = arith.constant 0 : index
    %c0_3 = arith.constant 0 : index
    %3 = vector.load %arg4[%c0_2, %c0_3] : memref<32x128xf32, #tpu.memory_space<vmem>>, vector<32x128xf32>
    tpu.vector_store %arg4[%c0_2, %c0_3], %2 {strides = array<i32>} : memref<32x128xf32, #tpu.memory_space<vmem>>, vector<32x128xf32>,
    %c0_4 = arith.constant 0 : index
    %c0_5 = arith.constant 0 : index
    %c0_6 = arith.constant 0 : index
    %4 = vector.load %arg0[%c0_4, %c0_5, %c0_6] : memref<2x28x28xf32, #tpu.memory_space<vmem>>, vector<1x28x28xf32>
    %5 = vector.shape_cast %4 : vector<1x28x28xf32> to vector<28x28xf32>
    %c1 = arith.constant 1 : index
    %c0_7 = arith.constant 0 : index
    %6 = vector.load %arg3[%c1, %c0_7] : memref<64x128xf32, #tpu.memory_space<vmem>>, vector<28x28xf32>
    tpu.vector_store %arg3[%c1, %c0_7], %5 {strides = array<i32>} : memref<64x128xf32, #tpu.memory_space<vmem>>, vector<28x28xf32>,
    %c1_8 = arith.constant 1 : index
    %c0_9 = arith.constant 0 : index
    %c0_10 = arith.constant 0 : index
    %7 = vector.load %arg0[%c1_8, %c0_9, %c0_10] : memref<2x28x28xf32, #tpu.memory_space<vmem>>, vector<1x28x28xf32>
    %8 = vector.shape_cast %7 : vector<1x28x28xf32> to vector<28x28xf32>
    %c33 = arith.constant 33 : index
    %c0_11 = arith.constant 0 : index
    %9 = vector.load %arg3[%c33, %c0_11] : memref<64x128xf32, #tpu.memory_space<vmem>>, vector<28x28xf32>
    tpu.vector_store %arg3[%c33, %c0_11], %8 {strides = array<i32>} : memref<64x128xf32, #tpu.memory_space<vmem>>, vector<28x28xf32>,
    %c0_12 = arith.constant 0 : index
    %c0_13 = arith.constant 0 : index
    %10 = vector.load %arg1[%c0_12, %c0_13] : memref<1800x128xf32, #tpu.memory_space<vmem>>, vector<384x128xf32>
    %c1792 = arith.constant 1792 : index
    %c0_14 = arith.constant 0 : index
    %11 = vector.load %arg1[%c1792, %c0_14] : memref<1800x128xf32, #tpu.memory_space<vmem>>, vector<1x128xf32>
    %c0_15 = arith.constant 0 : index
    %c0_16 = arith.constant 0 : index
    %12 = tpu.strided_load %arg3[%c0_15, %c0_16] {strides = array<i32: 2, 1>} : memref<64x128xf32, #tpu.memory_space<vmem>>, vector<14x128xf32>
    %c1_17 = arith.constant 1 : index
    %c0_18 = arith.constant 0 : index
    %13 = tpu.strided_load %arg3[%c1_17, %c0_18] {strides = array<i32: 2, 1>} : memref<64x128xf32, #tpu.memory_space<vmem>>, vector<14x128xf32>
    %c2 = arith.constant 2 : index
    %c0_19 = arith.constant 0 : index
    %14 = tpu.strided_load %arg3[%c2, %c0_19] {strides = array<i32: 2, 1>} : memref<64x128xf32, #tpu.memory_space<vmem>>, vector<14x128xf32>
    %15 = tpu.concatenate %12, %13, %14 in 1 : vector<14x128xf32>, vector<14x128xf32>, vector<14x128xf32> -> vector<14x384xf32>
    %cst_20 = arith.constant dense<0.000000e+00> : vector<14x128xf32>
    %16 = tpu.matmul %15, %10, %cst_20 {dimension_numbers = #tpu.dot_dimension_numbers<[1], [0], [0], [1], [0, 0, 1, 1], [], []>} : vector<14x384xf32>, vector<384x128xf32>, vector<14x128xf32> -> vector<14x128xf32>
    %17 = vector.broadcast %11 : vector<1x128xf32> to vector<14x128xf32>
    %18 = arith.addf %16, %17 : vector<14x128xf32>
    %c32 = arith.constant 32 : index
    %c0_21 = arith.constant 0 : index
    %19 = tpu.strided_load %arg3[%c32, %c0_21] {strides = array<i32: 2, 1>} : memref<64x128xf32, #tpu.memory_space<vmem>>, vector<14x128xf32>
    %c33_22 = arith.constant 33 : index
    %c0_23 = arith.constant 0 : index
    %20 = tpu.strided_load %arg3[%c33_22, %c0_23] {strides = array<i32: 2, 1>} : memref<64x128xf32, #tpu.memory_space<vmem>>, vector<14x128xf32>
    %c34 = arith.constant 34 : index
    %c0_24 = arith.constant 0 : index
    %21 = tpu.strided_load %arg3[%c34, %c0_24] {strides = array<i32: 2, 1>} : memref<64x128xf32, #tpu.memory_space<vmem>>, vector<14x128xf32>
    %22 = tpu.concatenate %19, %20, %21 in 1 : vector<14x128xf32>, vector<14x128xf32>, vector<14x128xf32> -> vector<14x384xf32>
    %cst_25 = arith.constant dense<0.000000e+00> : vector<14x128xf32>
    %23 = tpu.matmul %22, %10, %cst_25 {dimension_numbers = #tpu.dot_dimension_numbers<[1], [0], [0], [1], [0, 0, 1, 1], [], []>} : vector<14x384xf32>, vector<384x128xf32>, vector<14x128xf32> -> vector<14x128xf32>
    %24 = vector.broadcast %11 : vector<1x128xf32> to vector<14x128xf32>
    %25 = arith.addf %23, %24 : vector<14x128xf32>
    %cst_26 = arith.constant 0.000000e+00 : f32
    %26 = vector.broadcast %cst_26 : f32 to vector<14x128xf32>
    %27 = arith.maximumf %18, %26 : vector<14x128xf32>
    %c1_27 = arith.constant 1 : index
    %c0_28 = arith.constant 0 : index
    %28 = vector.load %arg4[%c1_27, %c0_28] : memref<32x128xf32, #tpu.memory_space<vmem>>, vector<14x128xf32>
    tpu.vector_store %arg4[%c1_27, %c0_28], %27 {strides = array<i32>} : memref<32x128xf32, #tpu.memory_space<vmem>>, vector<14x128xf32>,
    %cst_29 = arith.constant 0.000000e+00 : f32
    %29 = vector.broadcast %cst_29 : f32 to vector<14x128xf32>
    %30 = arith.maximumf %25, %29 : vector<14x128xf32>
    %c17 = arith.constant 17 : index
    %c0_30 = arith.constant 0 : index
    %31 = vector.load %arg4[%c17, %c0_30] : memref<32x128xf32, #tpu.memory_space<vmem>>, vector<14x128xf32>
    tpu.vector_store %arg4[%c17, %c0_30], %30 {strides = array<i32>} : memref<32x128xf32, #tpu.memory_space<vmem>>, vector<14x128xf32>,
    %c384 = arith.constant 384 : index
    %c0_31 = arith.constant 0 : index
    %32 = vector.load %arg1[%c384, %c0_31] : memref<1800x128xf32, #tpu.memory_space<vmem>>, vector<384x128xf32>
    %c1793 = arith.constant 1793 : index
    %c0_32 = arith.constant 0 : index
    %33 = vector.load %arg1[%c1793, %c0_32] : memref<1800x128xf32, #tpu.memory_space<vmem>>, vector<1x128xf32>
    %c0_33 = arith.constant 0 : index
    %c0_34 = arith.constant 0 : index
    %34 = tpu.strided_load %arg4[%c0_33, %c0_34] {strides = array<i32: 2, 1>} : memref<32x128xf32, #tpu.memory_space<vmem>>, vector<7x128xf32>
    %c1_35 = arith.constant 1 : index
    %c0_36 = arith.constant 0 : index
    %35 = tpu.strided_load %arg4[%c1_35, %c0_36] {strides = array<i32: 2, 1>} : memref<32x128xf32, #tpu.memory_space<vmem>>, vector<7x128xf32>
    %c2_37 = arith.constant 2 : index
    %c0_38 = arith.constant 0 : index
    %36 = tpu.strided_load %arg4[%c2_37, %c0_38] {strides = array<i32: 2, 1>} : memref<32x128xf32, #tpu.memory_space<vmem>>, vector<7x128xf32>
    %37 = tpu.concatenate %34, %35, %36 in 1 : vector<7x128xf32>, vector<7x128xf32>, vector<7x128xf32> -> vector<7x384xf32>
    %cst_39 = arith.constant dense<0.000000e+00> : vector<7x128xf32>
    %38 = tpu.matmul %37, %32, %cst_39 {dimension_numbers = #tpu.dot_dimension_numbers<[1], [0], [0], [1], [0, 0, 1, 1], [], []>} : vector<7x384xf32>, vector<384x128xf32>, vector<7x128xf32> -> vector<7x128xf32>
    %39 = vector.broadcast %33 : vector<1x128xf32> to vector<7x128xf32>
    %40 = arith.addf %38, %39 : vector<7x128xf32>
    %c16 = arith.constant 16 : index
    %c0_40 = arith.constant 0 : index
    %41 = tpu.strided_load %arg4[%c16, %c0_40] {strides = array<i32: 2, 1>} : memref<32x128xf32, #tpu.memory_space<vmem>>, vector<7x128xf32>
    %c17_41 = arith.constant 17 : index
    %c0_42 = arith.constant 0 : index
    %42 = tpu.strided_load %arg4[%c17_41, %c0_42] {strides = array<i32: 2, 1>} : memref<32x128xf32, #tpu.memory_space<vmem>>, vector<7x128xf32>
    %c18 = arith.constant 18 : index
    %c0_43 = arith.constant 0 : index
    %43 = tpu.strided_load %arg4[%c18, %c0_43] {strides = array<i32: 2, 1>} : memref<32x128xf32, #tpu.memory_space<vmem>>, vector<7x128xf32>
    %44 = tpu.concatenate %41, %42, %43 in 1 : vector<7x128xf32>, vector<7x128xf32>, vector<7x128xf32> -> vector<7x384xf32>
    %cst_44 = arith.constant dense<0.000000e+00> : vector<7x128xf32>
    %45 = tpu.matmul %44, %32, %cst_44 {dimension_numbers = #tpu.dot_dimension_numbers<[1], [0], [0], [1], [0, 0, 1, 1], [], []>} : vector<7x384xf32>, vector<384x128xf32>, vector<7x128xf32> -> vector<7x128xf32>
    %46 = vector.broadcast %33 : vector<1x128xf32> to vector<7x128xf32>
    %47 = arith.addf %45, %46 : vector<7x128xf32>
    %c1152 = arith.constant 1152 : index
    %c0_45 = arith.constant 0 : index
    %48 = vector.load %arg1[%c1152, %c0_45] : memref<1800x128xf32, #tpu.memory_space<vmem>>, vector<128x128xf32>
    %cst_46 = arith.constant dense<0.000000e+00> : vector<128xf32>
    %49 = vector.multi_reduction <add>, %40, %cst_46 [0] : vector<7x128xf32> to vector<128xf32>
    %50 = vector.shape_cast %49 : vector<128xf32> to vector<1x128xf32>
    %cst_47 = arith.constant dense<0.000000e+00> : vector<128xf32>
    %51 = vector.multi_reduction <add>, %47, %cst_47 [0] : vector<7x128xf32> to vector<128xf32>
    %52 = vector.shape_cast %51 : vector<128xf32> to vector<1x128xf32>
    %53 = arith.addf %50, %52 : vector<1x128xf32>
    %cst_48 = arith.constant dense<0.000000e+00> : vector<1x128xf32>
    %54 = tpu.matmul %53, %48, %cst_48 {dimension_numbers = #tpu.dot_dimension_numbers<[1], [0], [0], [1], [0, 0, 1, 1], [], []>} : vector<1x128xf32>, vector<128x128xf32>, vector<1x128xf32> -> vector<1x128xf32>
    %cst_49 = arith.constant 0.0102040814 : f32
    %55 = vector.broadcast %cst_49 : f32 to vector<1x128xf32>
    %56 = arith.mulf %54, %55 : vector<1x128xf32>
    %57 = vector.broadcast %56 : vector<1x128xf32> to vector<7x128xf32>
    %58 = arith.subf %40, %57 : vector<7x128xf32>
    %59 = vector.broadcast %56 : vector<1x128xf32> to vector<7x128xf32>
    %60 = arith.subf %47, %59 : vector<7x128xf32>
    %61 = arith.mulf %58, %58 : vector<7x128xf32>
    %cst_50 = arith.constant dense<0.000000e+00> : vector<128xf32>
    %62 = vector.multi_reduction <add>, %61, %cst_50 [0] : vector<7x128xf32> to vector<128xf32>
    %63 = vector.shape_cast %62 : vector<128xf32> to vector<1x128xf32>
    %64 = arith.mulf %60, %60 : vector<7x128xf32>
    %cst_51 = arith.constant dense<0.000000e+00> : vector<128xf32>
    %65 = vector.multi_reduction <add>, %64, %cst_51 [0] : vector<7x128xf32> to vector<128xf32>
    %66 = vector.shape_cast %65 : vector<128xf32> to vector<1x128xf32>
    %67 = arith.addf %63, %66 : vector<1x128xf32>
    %cst_52 = arith.constant dense<0.000000e+00> : vector<1x128xf32>
    %68 = tpu.matmul %67, %48, %cst_52 {dimension_numbers = #tpu.dot_dimension_numbers<[1], [0], [0], [1], [0, 0, 1, 1], [], []>} : vector<1x128xf32>, vector<128x128xf32>, vector<1x128xf32> -> vector<1x128xf32>
    %cst_53 = arith.constant 0.0102040814 : f32
    %69 = vector.broadcast %cst_53 : f32 to vector<1x128xf32>
    %70 = arith.mulf %68, %69 : vector<1x128xf32>
    %c1795 = arith.constant 1795 : index
    %c0_54 = arith.constant 0 : index
    %71 = vector.load %arg1[%c1795, %c0_54] : memref<1800x128xf32, #tpu.memory_space<vmem>>, vector<1x128xf32>
    %cst_55 = arith.constant 9.99999974E-6 : f32
    %72 = vector.broadcast %cst_55 : f32 to vector<1x128xf32>
    %73 = arith.addf %70, %72 : vector<1x128xf32>
    %74 = math.rsqrt %73 : vector<1x128xf32>
    %75 = arith.mulf %71, %74 : vector<1x128xf32>
    %c1796 = arith.constant 1796 : index
    %c0_56 = arith.constant 0 : index
    %76 = vector.load %arg1[%c1796, %c0_56] : memref<1800x128xf32, #tpu.memory_space<vmem>>, vector<1x128xf32>
    %77 = vector.broadcast %75 : vector<1x128xf32> to vector<7x128xf32>
    %78 = arith.mulf %58, %77 : vector<7x128xf32>
    %79 = vector.broadcast %76 : vector<1x128xf32> to vector<7x128xf32>
    %80 = arith.addf %78, %79 : vector<7x128xf32>
    %cst_57 = arith.constant 0.000000e+00 : f32
    %81 = vector.broadcast %cst_57 : f32 to vector<7x128xf32>
    %82 = arith.maximumf %80, %81 : vector<7x128xf32>
    %c0_58 = arith.constant 0 : index
    %c0_59 = arith.constant 0 : index
    %83 = vector.load %arg5[%c0_58, %c0_59] : memref<16x128xf32, #tpu.memory_space<vmem>>, vector<7x128xf32>
    tpu.vector_store %arg5[%c0_58, %c0_59], %82 {strides = array<i32>} : memref<16x128xf32, #tpu.memory_space<vmem>>, vector<7x128xf32>,
    %84 = vector.broadcast %75 : vector<1x128xf32> to vector<7x128xf32>
    %85 = arith.mulf %60, %84 : vector<7x128xf32>
    %86 = vector.broadcast %76 : vector<1x128xf32> to vector<7x128xf32>
    %87 = arith.addf %85, %86 : vector<7x128xf32>
    %cst_60 = arith.constant 0.000000e+00 : f32
    %88 = vector.broadcast %cst_60 : f32 to vector<7x128xf32>
    %89 = arith.maximumf %87, %88 : vector<7x128xf32>
    %c8 = arith.constant 8 : index
    %c0_61 = arith.constant 0 : index
    %90 = vector.load %arg5[%c8, %c0_61] : memref<16x128xf32, #tpu.memory_space<vmem>>, vector<7x128xf32>
    tpu.vector_store %arg5[%c8, %c0_61], %89 {strides = array<i32>} : memref<16x128xf32, #tpu.memory_space<vmem>>, vector<7x128xf32>,
    %c768 = arith.constant 768 : index
    %c0_62 = arith.constant 0 : index
    %91 = vector.load %arg1[%c768, %c0_62] : memref<1800x128xf32, #tpu.memory_space<vmem>>, vector<384x128xf32>
    %c1794 = arith.constant 1794 : index
    %c0_63 = arith.constant 0 : index
    %92 = vector.load %arg1[%c1794, %c0_63] : memref<1800x128xf32, #tpu.memory_space<vmem>>, vector<1x128xf32>
    %c0_64 = arith.constant 0 : index
    %c0_65 = arith.constant 0 : index
    %93 = tpu.strided_load %arg5[%c0_64, %c0_65] {strides = array<i32: 2, 1>} : memref<16x128xf32, #tpu.memory_space<vmem>>, vector<3x128xf32>
    %c1_66 = arith.constant 1 : index
    %c0_67 = arith.constant 0 : index
    %94 = tpu.strided_load %arg5[%c1_66, %c0_67] {strides = array<i32: 2, 1>} : memref<16x128xf32, #tpu.memory_space<vmem>>, vector<3x128xf32>
    %c2_68 = arith.constant 2 : index
    %c0_69 = arith.constant 0 : index
    %95 = tpu.strided_load %arg5[%c2_68, %c0_69] {strides = array<i32: 2, 1>} : memref<16x128xf32, #tpu.memory_space<vmem>>, vector<3x128xf32>
    %96 = tpu.concatenate %93, %94, %95 in 1 : vector<3x128xf32>, vector<3x128xf32>, vector<3x128xf32> -> vector<3x384xf32>
    %cst_70 = arith.constant dense<0.000000e+00> : vector<3x128xf32>
    %97 = tpu.matmul %96, %91, %cst_70 {dimension_numbers = #tpu.dot_dimension_numbers<[1], [0], [0], [1], [0, 0, 1, 1], [], []>} : vector<3x384xf32>, vector<384x128xf32>, vector<3x128xf32> -> vector<3x128xf32>
    %98 = vector.broadcast %92 : vector<1x128xf32> to vector<3x128xf32>
    %99 = arith.addf %97, %98 : vector<3x128xf32>
    %c8_71 = arith.constant 8 : index
    %c0_72 = arith.constant 0 : index
    %100 = tpu.strided_load %arg5[%c8_71, %c0_72] {strides = array<i32: 2, 1>} : memref<16x128xf32, #tpu.memory_space<vmem>>, vector<3x128xf32>
    %c9 = arith.constant 9 : index
    %c0_73 = arith.constant 0 : index
    %101 = tpu.strided_load %arg5[%c9, %c0_73] {strides = array<i32: 2, 1>} : memref<16x128xf32, #tpu.memory_space<vmem>>, vector<3x128xf32>
    %c10 = arith.constant 10 : index
    %c0_74 = arith.constant 0 : index
    %102 = tpu.strided_load %arg5[%c10, %c0_74] {strides = array<i32: 2, 1>} : memref<16x128xf32, #tpu.memory_space<vmem>>, vector<3x128xf32>
    %103 = tpu.concatenate %100, %101, %102 in 1 : vector<3x128xf32>, vector<3x128xf32>, vector<3x128xf32> -> vector<3x384xf32>
    %cst_75 = arith.constant dense<0.000000e+00> : vector<3x128xf32>
    %104 = tpu.matmul %103, %91, %cst_75 {dimension_numbers = #tpu.dot_dimension_numbers<[1], [0], [0], [1], [0, 0, 1, 1], [], []>} : vector<3x384xf32>, vector<384x128xf32>, vector<3x128xf32> -> vector<3x128xf32>
    %105 = vector.broadcast %92 : vector<1x128xf32> to vector<3x128xf32>
    %106 = arith.addf %104, %105 : vector<3x128xf32>
    %cst_76 = arith.constant 0.000000e+00 : f32
    %107 = vector.broadcast %cst_76 : f32 to vector<3x128xf32>
    %108 = arith.maximumf %99, %107 : vector<3x128xf32>
    %cst_77 = arith.constant 0.000000e+00 : f32
    %109 = vector.broadcast %cst_77 : f32 to vector<3x128xf32>
    %110 = arith.maximumf %106, %109 : vector<3x128xf32>
    %c1280 = arith.constant 1280 : index
    %c0_78 = arith.constant 0 : index
    %111 = vector.load %arg1[%c1280, %c0_78] : memref<1800x128xf32, #tpu.memory_space<vmem>>, vector<128x128xf32>
    %c1408 = arith.constant 1408 : index
    %c0_79 = arith.constant 0 : index
    %112 = vector.load %arg1[%c1408, %c0_79] : memref<1800x128xf32, #tpu.memory_space<vmem>>, vector<128x128xf32>
    %c1536 = arith.constant 1536 : index
    %c0_80 = arith.constant 0 : index
    %113 = vector.load %arg1[%c1536, %c0_80] : memref<1800x128xf32, #tpu.memory_space<vmem>>, vector<128x128xf32>
    %c1664 = arith.constant 1664 : index
    %c0_81 = arith.constant 0 : index
    %114 = vector.load %arg1[%c1664, %c0_81] : memref<1800x128xf32, #tpu.memory_space<vmem>>, vector<128x16xf32>
    %c1797 = arith.constant 1797 : index
    %c0_82 = arith.constant 0 : index
    %115 = vector.load %arg1[%c1797, %c0_82] : memref<1800x128xf32, #tpu.memory_space<vmem>>, vector<1x128xf32>
    %c1798 = arith.constant 1798 : index
    %c0_83 = arith.constant 0 : index
    %116 = vector.load %arg1[%c1798, %c0_83] : memref<1800x128xf32, #tpu.memory_space<vmem>>, vector<1x128xf32>
    %117 = vector.extract_strided_slice %116 {offsets = [0, 0], sizes = [1, 16], strides = [1, 1]} : vector<1x128xf32> to vector<1x16xf32>
    %118 = vector.extract_strided_slice %108 {offsets = [0, 0], sizes = [1, 128], strides = [1, 1]} : vector<3x128xf32> to vector<1x128xf32>
    %cst_84 = arith.constant dense<0.000000e+00> : vector<1x128xf32>
    %119 = tpu.matmul %118, %111, %cst_84 {dimension_numbers = #tpu.dot_dimension_numbers<[1], [0], [0], [1], [0, 0, 1, 1], [], []>} : vector<1x128xf32>, vector<128x128xf32>, vector<1x128xf32> -> vector<1x128xf32>
    %120 = arith.addf %115, %119 : vector<1x128xf32>
    %121 = vector.extract_strided_slice %108 {offsets = [1, 0], sizes = [1, 128], strides = [1, 1]} : vector<3x128xf32> to vector<1x128xf32>
    %cst_85 = arith.constant dense<0.000000e+00> : vector<1x128xf32>
    %122 = tpu.matmul %121, %112, %cst_85 {dimension_numbers = #tpu.dot_dimension_numbers<[1], [0], [0], [1], [0, 0, 1, 1], [], []>} : vector<1x128xf32>, vector<128x128xf32>, vector<1x128xf32> -> vector<1x128xf32>
    %123 = arith.addf %120, %122 : vector<1x128xf32>
    %124 = vector.extract_strided_slice %108 {offsets = [2, 0], sizes = [1, 128], strides = [1, 1]} : vector<3x128xf32> to vector<1x128xf32>
    %cst_86 = arith.constant dense<0.000000e+00> : vector<1x128xf32>
    %125 = tpu.matmul %124, %113, %cst_86 {dimension_numbers = #tpu.dot_dimension_numbers<[1], [0], [0], [1], [0, 0, 1, 1], [], []>} : vector<1x128xf32>, vector<128x128xf32>, vector<1x128xf32> -> vector<1x128xf32>
    %126 = arith.addf %123, %125 : vector<1x128xf32>
    %cst_87 = arith.constant 0.000000e+00 : f32
    %127 = vector.broadcast %cst_87 : f32 to vector<1x128xf32>
    %128 = arith.maximumf %126, %127 : vector<1x128xf32>
    %cst_88 = arith.constant dense<0.000000e+00> : vector<1x16xf32>
    %129 = tpu.matmul %128, %114, %cst_88 {dimension_numbers = #tpu.dot_dimension_numbers<[1], [0], [0], [1], [0, 0, 1, 1], [], []>} : vector<1x128xf32>, vector<128x16xf32>, vector<1x16xf32> -> vector<1x16xf32>
    %130 = arith.addf %129, %117 : vector<1x16xf32>
    %c0_89 = arith.constant 0 : index
    %c0_90 = arith.constant 0 : index
    %131 = vector.load %arg2[%c0_89, %c0_90] : memref<2x16xf32, #tpu.memory_space<vmem>>, vector<1x16xf32>
    tpu.vector_store %arg2[%c0_89, %c0_90], %130 {strides = array<i32>} : memref<2x16xf32, #tpu.memory_space<vmem>>, vector<1x16xf32>,
    %132 = vector.extract_strided_slice %110 {offsets = [0, 0], sizes = [1, 128], strides = [1, 1]} : vector<3x128xf32> to vector<1x128xf32>
    %cst_91 = arith.constant dense<0.000000e+00> : vector<1x128xf32>
    %133 = tpu.matmul %132, %111, %cst_91 {dimension_numbers = #tpu.dot_dimension_numbers<[1], [0], [0], [1], [0, 0, 1, 1], [], []>} : vector<1x128xf32>, vector<128x128xf32>, vector<1x128xf32> -> vector<1x128xf32>
    %134 = arith.addf %115, %133 : vector<1x128xf32>
    %135 = vector.extract_strided_slice %110 {offsets = [1, 0], sizes = [1, 128], strides = [1, 1]} : vector<3x128xf32> to vector<1x128xf32>
    %cst_92 = arith.constant dense<0.000000e+00> : vector<1x128xf32>
    %136 = tpu.matmul %135, %112, %cst_92 {dimension_numbers = #tpu.dot_dimension_numbers<[1], [0], [0], [1], [0, 0, 1, 1], [], []>} : vector<1x128xf32>, vector<128x128xf32>, vector<1x128xf32> -> vector<1x128xf32>
    %137 = arith.addf %134, %136 : vector<1x128xf32>
    %138 = vector.extract_strided_slice %110 {offsets = [2, 0], sizes = [1, 128], strides = [1, 1]} : vector<3x128xf32> to vector<1x128xf32>
    %cst_93 = arith.constant dense<0.000000e+00> : vector<1x128xf32>
    %139 = tpu.matmul %138, %113, %cst_93 {dimension_numbers = #tpu.dot_dimension_numbers<[1], [0], [0], [1], [0, 0, 1, 1], [], []>} : vector<1x128xf32>, vector<128x128xf32>, vector<1x128xf32> -> vector<1x128xf32>
    %140 = arith.addf %137, %139 : vector<1x128xf32>
    %cst_94 = arith.constant 0.000000e+00 : f32
    %141 = vector.broadcast %cst_94 : f32 to vector<1x128xf32>
    %142 = arith.maximumf %140, %141 : vector<1x128xf32>
    %cst_95 = arith.constant dense<0.000000e+00> : vector<1x16xf32>
    %143 = tpu.matmul %142, %114, %cst_95 {dimension_numbers = #tpu.dot_dimension_numbers<[1], [0], [0], [1], [0, 0, 1, 1], [], []>} : vector<1x128xf32>, vector<128x16xf32>, vector<1x16xf32> -> vector<1x16xf32>
    %144 = arith.addf %143, %117 : vector<1x16xf32>
    %c1_96 = arith.constant 1 : index
    %c0_97 = arith.constant 0 : index
    %145 = vector.load %arg2[%c1_96, %c0_97] : memref<2x16xf32, #tpu.memory_space<vmem>>, vector<1x16xf32>
    tpu.vector_store %arg2[%c1_96, %c0_97], %144 {strides = array<i32>} : memref<2x16xf32, #tpu.memory_space<vmem>>, vector<1x16xf32>,
    return
  }
}

</mosaic_0001>

<bundles_post_ra>
// kernel: encoder_forward.1
= control target key start
LH: loop header
LB: loop body
LE: loop exit
PB: predicated region body
PF: predicated region fallthrough
CT: control target
= control target key end

     0   :  { %7 = vsyncpa [#allocation6], 0  ;;  %s1591_s0 = inlined_call_operand.vmem [shape: f32[2,28,28], index: 0, kind: input, shape index: {}]   ;;  %s1592_s1 = inlined_call_operand.hbm [shape: f32[1800,128], index: 1, kind: input, shape index: {}]   ;;  %s1593_s2 = inlined_call_operand.hbm [shape: f32[2,16], index: 2, kind: output, shape index: {}]  }
   0x1   :  { %8 = vsyncpa [#allocation7], 0  ;;  %s15_s11 = sshll.u32 %s1592_s1, 4  ;;  %s1091_s12 = smov [#allocation5]   ;;  %s16_s11 = int_to_ptr.hbm [resolvable:$true] %s15_s11 }
   0x2   :  { %s17_s13 = sshll.u32 %s1091_s12, 4  ;;  %s1092_s14 = smov 128   ;;  %s18_s13 = int_to_ptr.vmem [resolvable:$true] %s17_s13 }
   0x3   :  { %s1093_s15 = smov 8  }
   0x4   :  { %23 = dma.hbm_to_vmem [thread:$0]  %s16_s11, 28800, %s18_s13, [#allocation6], %s1092_s14, %s1092_s14, %s1093_s15  }
   0x5   :  { %1087 = dma.done.wait [#allocation6], 28800  }
   0x6   :  { %1088 = vsyncadd [#allocation6], 4294938496  ;;  %v1094_v0 = vmov 0.0   ;;  %v74_v1 = vld [vmem:[#allocation5 + $0x78] sm:$0xff]  ;;  %v73_v3 = vld [vmem:[#allocation5 + $0x70] sm:$0xff]  ;;  %vm44_vm0 = vcmask 228352  }
   0x7   :  { %28 = vst [vmem:[#allocation2] sm:$0xff] %v1094_v0  ;;  %v1114_v2 = vld [vmem:[#allocation5 + $0x178] sm:$0xff]  ;;  %120 = vmatpush.msra.mxu0 %v74_v1  ;;  %v1119_v5 = vld [vmem:[#allocation5 + $0x170] sm:$0xff]  ;;  %v72_v6 = vld [vmem:[#allocation5 + $0x68] sm:$0xff]  ;;  %201 = vmatpush.msra.mxu3 %v74_v1  ;;  %vm48_vm1 = vcmask 224256   ;;  %vm475_vm2 = vcmask 1046528  }
   0x8   :  { %29 = vst [vmem:[#allocation2 + $0x8] sm:$0xff] %v1094_v0  ;;  %166 = vmatpush.msra.mxu2 %v1114_v2  ;;  %v1117_v4 = vld [vmem:[#allocation5 + $0xf8] sm:$0xff]  ;;  %v1122_v7 = vld [vmem:[#allocation5 + $0xf0] sm:$0xff]  ;;  %v1124_v8 = vld [vmem:[#allocation5 + $0x168] sm:$0xff]  ;;  %vm915_vm6 = vcmask 122880   ;;  %s1014_s6 = sshll.u32 %s1593_s2, 4  ;;  %s1015_s6 = int_to_ptr.hbm [resolvable:$true] %s1014_s6 }
   0x9   :  { %30 = vst [vmem:[#allocation2 + $0x10] sm:$0xff] %v1094_v0  ;;  %143 = vmatpush.msra.mxu1 %v1117_v4  ;;  %121 = vmatpush.msra.mxu0 %v73_v3  ;;  %v1127_v9 = vld [vmem:[#allocation5 + $0xe8] sm:$0xff]  ;;  %v71_v10 = vld [vmem:[#allocation5 + $0x60] sm:$0xff]  ;;  %v70_v13 = vld [vmem:[#allocation5 + $0x58] sm:$0xff] }
   0xa   :  { %31 = vst [vmem:[#allocation2 + $0x18] sm:$0xff] %v1094_v0  ;;  %167 = vmatpush.msra.mxu2 %v1119_v5  ;;  %v1130_v11 = vld [vmem:[#allocation5 + $0x160] sm:$0xff]  ;;  %202 = vmatpush.msra.mxu3 %v73_v3  ;;  %v1136_v14 = vld [vmem:[#allocation5 + $0x158] sm:$0xff]  ;;  %v69_v16 = vld [vmem:[#allocation5 + $0x50] sm:$0xff] }
   0xb   :  { %32 = vst [vmem:[#allocation2 + $0x20] sm:$0xff] %v1094_v0  ;;  %144 = vmatpush.msra.mxu1 %v1122_v7  ;;  %122 = vmatpush.msra.mxu0 %v72_v6  ;;  %v1133_v12 = vld [vmem:[#allocation5 + $0xe0] sm:$0xff]  ;;  %v1139_v15 = vld [vmem:[#allocation5 + $0xd8] sm:$0xff]  ;;  %v1142_v17 = vld [vmem:[#allocation5 + $0x150] sm:$0xff] }
   0xc   :  { %33 = vst [vmem:[#allocation2 + $0x28] sm:$0xff] %v1094_v0  ;;  %168 = vmatpush.msra.mxu2 %v1124_v8  ;;  %203 = vmatpush.msra.mxu3 %v72_v6  ;;  %v1145_v18 = vld [vmem:[#allocation5 + $0xd0] sm:$0xff]  ;;  %v68_v19 = vld [vmem:[#allocation5 + $0x48] sm:$0xff]  ;;  %v67_v22 = vld [vmem:[#allocation5 + $0x40] sm:$0xff] }
   0xd   :  { %34 = vst [vmem:[#allocation2 + $0x30] sm:$0xff] %v1094_v0  ;;  %145 = vmatpush.msra.mxu1 %v1127_v9  ;;  %123 = vmatpush.msra.mxu0 %v71_v10  ;;  %v1148_v20 = vld [vmem:[#allocation5 + $0x148] sm:$0xff]  ;;  %v1154_v23 = vld [vmem:[#allocation5 + $0x140] sm:$0xff]  ;;  %v66_v24 = vld [vmem:[#allocation5 + $0x38] sm:$0xff] }
   0xe   :  { %35 = vst [vmem:[#allocation2 + $0x38] sm:$0xff] %v1094_v0  ;;  %169 = vmatpush.msra.mxu2 %v1130_v11  ;;  %204 = vmatpush.msra.mxu3 %v71_v10  ;;  %v1151_v21 = vld [vmem:[#allocation5 + $0xc8] sm:$0xff]  ;;  %v1157_v25 = vld [vmem:[#allocation5 + $0xc0] sm:$0xff]  ;;  %v1160_v26 = vld [vmem:[#allocation5 + $0x138] sm:$0xff] }
   0xf   :  { %36 = vst [vmem:[#allocation3] sm:$0xff] %v1094_v0  ;;  %146 = vmatpush.msra.mxu1 %v1133_v12  ;;  %124 = vmatpush.msra.mxu0 %v70_v13  ;;  %v65_v27 = vld [vmem:[#allocation5 + $0x30] sm:$0xff]  ;;  %v1162_v28 = vld [vmem:[#allocation5 + $0xb8] sm:$0xff]  ;;  %v64_v32 = vld [vmem:[#allocation5 + $0x28] sm:$0xff] }
  0x10   :  { %37 = vst [vmem:[#allocation3 + $0x8] sm:$0xff] %v1094_v0  ;;  %170 = vmatpush.msra.mxu2 %v1136_v14  ;;  %205 = vmatpush.msra.mxu3 %v70_v13  ;;  %v1165_v29 = vld [vmem:[#allocation5 + $0x130] sm:$0xff]  ;;  %v1173_v33 = vld [vmem:[#allocation5 + $0x128] sm:$0xff]  ;;  %v41_v34 = vld [vmem:[%s1591_s0 + $0x8] sm:$0xff] }
  0x11   :  { %38 = vst [vmem:[#allocation3 + $0x10] sm:$0xff] %v1094_v0  ;;  %147 = vmatpush.msra.mxu1 %v1139_v15  ;;  %125 = vmatpush.msra.mxu0 %v69_v16  ;;  %v1167_v30 = vld [vmem:[#allocation5 + $0xb0] sm:$0xff]  ;;  %v42_v35 = vld [vmem:[%s1591_s0 + $0x10] sm:$0xff]  ;;  %v1183_v36 = vld [vmem:[#allocation5 + $0xa8] sm:$0xff] }
  0x12   :  { %39 = vst [vmem:[#allocation3 + $0x18] sm:$0xff] %v1094_v0  ;;  %171 = vmatpush.msra.mxu2 %v1142_v17  ;;  %206 = vmatpush.msra.mxu3 %v69_v16  ;;  %v40_v31 = vld [vmem:[%s1591_s0] sm:$0xff]  ;;  %v43_v37 = vld [vmem:[%s1591_s0 + $0x18] sm:$0xf]  ;;  %v1025_v39 = vld [vmem:[%s1591_s0 + $0x28] sm:$0xff] }
  0x13   :  { %148 = vmatpush.msra.mxu1 %v1145_v18  ;;  %126 = vmatpush.msra.mxu0 %v68_v19  ;;  %45 = vst.msk [vmem:[#allocation2 + $0x1] sm:$0xff] %vm44_vm0, %v40_v31  ;;  %v1024_v38 = vld [vmem:[%s1591_s0 + $0x20] sm:$0xff]  ;;  %v63_v40 = vld [vmem:[#allocation5 + $0x20] sm:$0xff]  ;;  %v62_v43 = vld [vmem:[#allocation5 + $0x18] sm:$0xff] }
  0x14   :  { %172 = vmatpush.msra.mxu2 %v1148_v20  ;;  %207 = vmatpush.msra.mxu3 %v68_v19  ;;  %46 = vst.msk [vmem:[#allocation2 + $0x9] sm:$0xff] %vm44_vm0, %v41_v34  ;;  %v1200_v41 = vld [vmem:[#allocation5 + $0x120] sm:$0xff]  ;;  %v1208_v44 = vld [vmem:[#allocation5 + $0x118] sm:$0xff]  ;;  %v61_v47 = vld [vmem:[#allocation5 + $0x10] sm:$0xff] }
  0x15   :  { %149 = vmatpush.msra.mxu1 %v1151_v21  ;;  %127 = vmatpush.msra.mxu0 %v67_v22  ;;  %47 = vst.msk [vmem:[#allocation2 + $0x11] sm:$0xff] %vm44_vm0, %v42_v35  ;;  %v1204_v42 = vld [vmem:[#allocation5 + $0xa0] sm:$0xff]  ;;  %v1211_v45 = vld [vmem:[#allocation5 + $0x98] sm:$0xff]  ;;  %v1217_v48 = vld [vmem:[#allocation5 + $0x110] sm:$0xff] }
  0x16   :  { %173 = vmatpush.msra.mxu2 %v1154_v23  ;;  %208 = vmatpush.msra.mxu3 %v67_v22  ;;  %49 = vst.msk [vmem:[#allocation2 + $0x19] sm:$0xf] %vm48_vm1, %v43_v37  ;;  %v1026_v46 = vld [vmem:[%s1591_s0 + $0x30] sm:$0xff]  ;;  %v1027_v49 = vld [vmem:[%s1591_s0 + $0x38] sm:$0xf]  ;;  %v1223_v50 = vld [vmem:[#allocation5 + $0x90] sm:$0xff] }
  0x17   :  { %150 = vmatpush.msra.mxu1 %v1157_v25  ;;  %128 = vmatpush.msra.mxu0 %v66_v24  ;;  %55 = vst.msk [vmem:[#allocation2 + $0x21] sm:$0xff] %vm44_vm0, %v1024_v38  ;;  %v60_v51 = vld [vmem:[#allocation5 + $0x8] sm:$0xff]  ;;  %v59_v54 = vld [vmem:[#allocation5] sm:$0xff]  ;;  %v293_v1 = vld [vmem:[#allocation5 + $0x1f8] sm:$0xff]  ;;  %s1095_s0 = smov [#allocation8]  }
  0x18   :  { %174 = vmatpush.msra.mxu2 %v1160_v26  ;;  %209 = vmatpush.msra.mxu3 %v66_v24  ;;  %56 = vst.msk [vmem:[#allocation2 + $0x29] sm:$0xff] %vm44_vm0, %v1025_v39  ;;  %v1227_v52 = vld [vmem:[#allocation5 + $0x108] sm:$0xff]  ;;  %v1234_v55 = vld [vmem:[#allocation5 + $0x100] sm:$0xff]  ;;  %v292_v3 = vld [vmem:[#allocation5 + $0x1f0] sm:$0xff]  ;;  %s1012_s3 = sshll.u32 %s1095_s0, 4  ;;  %s1013_s3 = int_to_ptr.vmem [resolvable:$true] %s1012_s3 }
  0x19   :  { %151 = vmatpush.msra.mxu1 %v1162_v28  ;;  %129 = vmatpush.msra.mxu0 %v65_v27  ;;  %57 = vst.msk [vmem:[#allocation2 + $0x31] sm:$0xff] %vm44_vm0, %v1026_v46  ;;  %v1230_v53 = vld [vmem:[#allocation5 + $0x88] sm:$0xff]  ;;  %v1238_v57 = vld [vmem:[#allocation5 + $0x80] sm:$0xff]  ;;  %v1272_v10 = vld [vmem:[#allocation5 + $0x258] sm:$0xff] }
  0x1a   :  { %175 = vmatpush.msra.mxu2 %v1165_v29  ;;  %210 = vmatpush.msra.mxu3 %v65_v27  ;;  %58 = vst.msk [vmem:[#allocation2 + $0x39] sm:$0xf] %vm48_vm1, %v1027_v49  ;;  %v1262_v6 = vld [vmem:[#allocation5 + $0x268] sm:$0xff]  ;;  %v288_v16 = vld [vmem:[#allocation5 + $0x1d0] sm:$0xff]  ;;  %v286_v22 = vld [vmem:[#allocation5 + $0x1c0] sm:$0xff] }
  0x1b   :  { %152 = vmatpush.msra.mxu1 %v1167_v30  ;;  %130 = vmatpush.msra.mxu0 %v64_v32  ;;  %v116_v56 = vld [vmem:[#allocation2 + $0x2] ss:$2 sm:$0xff]  ;;  %v112_v59 = vld [vmem:[#allocation2 + $0x1] ss:$2 sm:$0xff]  ;;  %v287_v19 = vld [vmem:[#allocation5 + $0x1c8] sm:$0xff] }
  0x1c   :  { %176 = vmatpush.msra.mxu2 %v1173_v33  ;;  %211 = vmatpush.msra.mxu3 %v64_v32  ;;  %v108_v58 = vld [vmem:[#allocation2] ss:$2 sm:$0xff]  ;;  %v1307_v24 = vld [vmem:[#allocation5 + $0x2e0] sm:$0xff]  ;;  %v283_v31 = vld [vmem:[#allocation5 + $0x1a8] sm:$0xff] }
  0x1d   :  { %153 = vmatpush.msra.mxu1 %v1183_v36  ;;  %131 = vmatpush.msra.mxu0 %v63_v40  ;;  %v118_v61 = vld [vmem:[#allocation2 + $0x12] ss:$2 sm:$0x3f]  ;;  %v114_v63 = vld [vmem:[#allocation2 + $0x11] ss:$2 sm:$0x3f] }
  0x1e   :  { %177 = vmatpush.msra.mxu2 %v1200_v41  ;;  %212 = vmatpush.msra.mxu3 %v63_v40  ;;  %v110_v62 = vld [vmem:[#allocation2 + $0x10] ss:$2 sm:$0x3f]  ;;  %v1313_v27 = vld [vmem:[#allocation5 + $0x2d8] sm:$0xff]  ;;  %v280_v40 = vld [vmem:[#allocation5 + $0x190] sm:$0xff] }
  0x1f   :  { %154 = vmatpush.msra.mxu1 %v1204_v42  ;;  %132 = vmatpush.msra.mxu0 %v62_v43  ;;  %v190_v60 = vld [vmem:[#allocation2 + $0x20] ss:$2 sm:$0xff]  ;;  %v1322_v32 = vld [vmem:[#allocation5 + $0x228] sm:$0xff]  ;;  %v282_v34 = vld [vmem:[#allocation5 + $0x1a0] sm:$0xff] }
  0x20   :  { %178 = vmatpush.msra.mxu2 %v1208_v44  ;;  %213 = vmatpush.msra.mxu3 %v62_v43  ;;  %v198_v13 = vld [vmem:[#allocation2 + $0x22] ss:$2 sm:$0xff]  ;;  %v279_v43 = vld [vmem:[#allocation5 + $0x188] sm:$0xff] }
  0x21   :  { %155 = vmatpush.msra.mxu1 %v1211_v45  ;;  %133 = vmatpush.msra.mxu0 %v61_v47  ;;  %v192_v0 = vld [vmem:[#allocation2 + $0x30] ss:$2 sm:$0x3f]  ;;  %v281_v37 = vld [vmem:[#allocation5 + $0x198] sm:$0xff] }
  0x22   :  { %179 = vmatpush.msra.mxu2 %v1217_v48  ;;  %214 = vmatpush.msra.mxu3 %v61_v47  ;;  %v1328_v35 = vld [vmem:[#allocation5 + $0x220] sm:$0xff]  ;;  %v1331_v38 = vld [vmem:[#allocation5 + $0x218] sm:$0xff] }
  0x23   :  { %156 = vmatpush.msra.mxu1 %v1223_v50  ;;  %134 = vmatpush.msra.mxu0 %v60_v51  ;;  %v317_v39 = vld [vmem:[#allocation5 + $0x2b8] sm:$0xff]  ;;  %v278_v46 = vld [vmem:[#allocation5 + $0x180] sm:$0xff] }
  0x24   :  { %180 = vmatpush.msra.mxu2 %v1227_v52  ;;  %215 = vmatpush.msra.mxu3 %v60_v51  ;;  %v1339_v47 = vld [vmem:[#allocation5 + $0x200] sm:$0xff]  ;;  %v313_v49 = vld [vmem:[#allocation5 + $0x298] sm:$0xff]  ;;  %v311_v51 = vld [vmem:[#allocation5 + $0x288] sm:$0xff] }
  0x25   :  { %157 = vmatpush.msra.mxu1 %v1230_v53  ;;  %135 = vmatpush.msra.mxu0 %v59_v54 }
  0x26   :  { %181 = vmatpush.msra.mxu2 %v1234_v55  ;;  %136 = vmatmul.f32.vlgmr.msra.gmra.mxu0 %v108_v58 }
  0x27   :  { %182 = vmatmul.f32.vlgmr.msra.gmra.mxu2 %v116_v56  ;;  %224 = vmatpush.msrb.mxu0 %v1117_v4  ;;  %v1257_v4 = vld [vmem:[#allocation5 + $0x270] sm:$0xff] }
  0x28   :  { %158 = vmatpush.msra.mxu1 %v1238_v57  ;;  %216 = vmatpush.msra.mxu3 %v59_v54 }
  0x29   :  { %225 = vmatpush.msrb.mxu0 %v1122_v7  ;;  %159 = vmatmul.f32.vlgmr.msra.gmra.mxu1 %v112_v59  ;;  %v290_v7 = vld [vmem:[#allocation5 + $0x1e0] sm:$0xff] }
  0x2a   :  { %247 = vmatpush.msrb.mxu1 %v1114_v2  ;;  %217 = vmatmul.f32.vlgmr.msra.gmra.mxu3 %v190_v60  ;;  %v1253_v2 = vld [vmem:[#allocation5 + $0x278] sm:$0xff] }
  0x2b   :  { %226 = vmatpush.msrb.mxu0 %v1127_v9  ;;  %333 = vmatpush.msrb.mxu2 %v293_v1  ;;  %v289_v9 = vld [vmem:[#allocation5 + $0x1d8] sm:$0xff] }
  0x2c   :  { %248 = vmatpush.msrb.mxu1 %v1119_v5  ;;  %353 = vmatpush.msrb.mxu3 %v1253_v2  ;;  %v291_v5 = vld [vmem:[#allocation5 + $0x1e8] sm:$0xff] }
  0x2d   :  { %227 = vmatpush.msrb.mxu0 %v1133_v12  ;;  %334 = vmatpush.msrb.mxu2 %v292_v3  ;;  %v1286_v12 = vld [vmem:[#allocation5 + $0x2f8] sm:$0xff] }
  0x2e   :  { %249 = vmatpush.msrb.mxu1 %v1124_v8  ;;  %139 = vmatmul.f32.gmra.mxu0 %v110_v62  ;;  %v1267_v8 = vld [vmem:[#allocation5 + $0x260] sm:$0xff] }
  0x2f   :  { %185 = vmatmul.f32.gmra.mxu2 %v118_v61  ;;  %228 = vmatpush.msrb.mxu0 %v1139_v15  ;;  %v200_v15 = vld [vmem:[#allocation2 + $0x32] ss:$2 sm:$0x3f] }
  0x30   :  { %250 = vmatpush.msrb.mxu1 %v1130_v11  ;;  %354 = vmatpush.msrb.mxu3 %v1257_v4  ;;  %v194_v11 = vld [vmem:[#allocation2 + $0x21] ss:$2 sm:$0xff] }
  0x31   :  { %229 = vmatpush.msrb.mxu0 %v1145_v18  ;;  %162 = vmatmul.f32.gmra.mxu1 %v114_v63  ;;  %v1294_v18 = vld [vmem:[#allocation5 + $0x2f0] sm:$0xff] }
  0x32   :  { %251 = vmatpush.msrb.mxu1 %v1136_v14  ;;  %220 = vmatmul.f32.gmra.mxu3 %v192_v0  ;;  %v196_v14 = vld [vmem:[#allocation2 + $0x31] ss:$2 sm:$0x3f] }
  0x33   :  { %230 = vmatpush.msrb.mxu0 %v1151_v21  ;;  %335 = vmatpush.msrb.mxu2 %v291_v5  ;;  %v1300_v21 = vld [vmem:[#allocation5 + $0x2e8] sm:$0xff] }
  0x34   :  { %252 = vmatpush.msrb.mxu1 %v1142_v17  ;;  %355 = vmatpush.msrb.mxu3 %v1262_v6  ;;  %v1292_v17 = vld [vmem:[#allocation5 + $0x250] sm:$0xff] }
  0x35   :  { %231 = vmatpush.msrb.mxu0 %v1157_v25  ;;  %336 = vmatpush.msrb.mxu2 %v290_v7  ;;  %v285_v25 = vld [vmem:[#allocation5 + $0x1b8] sm:$0xff] }
  0x36   :  { %253 = vmatpush.msrb.mxu1 %v1148_v20  ;;  %356 = vmatpush.msrb.mxu3 %v1267_v8  ;;  %v1298_v20 = vld [vmem:[#allocation5 + $0x248] sm:$0xff] }
  0x37   :  { %232 = vmatpush.msrb.mxu0 %v1162_v28  ;;  %337 = vmatpush.msrb.mxu2 %v289_v9  ;;  %v284_v28 = vld [vmem:[#allocation5 + $0x1b0] sm:$0xff] }
  0x38   :  { %254 = vmatpush.msrb.mxu1 %v1154_v23  ;;  %357 = vmatpush.msrb.mxu3 %v1272_v10  ;;  %v1304_v23 = vld [vmem:[#allocation5 + $0x240] sm:$0xff] }
  0x39   :  { %233 = vmatpush.msrb.mxu0 %v1167_v30  ;;  %338 = vmatpush.msrb.mxu2 %v288_v16  ;;  %v1319_v30 = vld [vmem:[#allocation5 + $0x2d0] sm:$0xff] }
  0x3a   :  { %255 = vmatpush.msrb.mxu1 %v1160_v26  ;;  %358 = vmatpush.msrb.mxu3 %v1292_v17  ;;  %v1310_v26 = vld [vmem:[#allocation5 + $0x238] sm:$0xff] }
  0x3b   :  { %234 = vmatpush.msrb.mxu0 %v1183_v36  ;;  %339 = vmatpush.msrb.mxu2 %v287_v19  ;;  %v318_v36 = vld [vmem:[#allocation5 + $0x2c0] sm:$0xff] }
  0x3c   :  { %256 = vmatpush.msrb.mxu1 %v1165_v29  ;;  %359 = vmatpush.msrb.mxu3 %v1298_v20  ;;  %v1316_v29 = vld [vmem:[#allocation5 + $0x230] sm:$0xff] }
  0x3d   :  { %235 = vmatpush.msrb.mxu0 %v1204_v42  ;;  %340 = vmatpush.msrb.mxu2 %v286_v22  ;;  %v316_v42 = vld [vmem:[#allocation5 + $0x2b0] sm:$0xff] }
  0x3e   :  { %257 = vmatpush.msrb.mxu1 %v1173_v33  ;;  %360 = vmatpush.msrb.mxu3 %v1304_v23  ;;  %v1325_v33 = vld [vmem:[#allocation5 + $0x2c8] sm:$0xff] }
  0x3f   :  { %236 = vmatpush.msrb.mxu0 %v1211_v45  ;;  %341 = vmatpush.msrb.mxu2 %v285_v25  ;;  %v315_v45 = vld [vmem:[#allocation5 + $0x2a8] sm:$0xff] }
  0x40   :  { %258 = vmatpush.msrb.mxu1 %v1200_v41  ;;  %361 = vmatpush.msrb.mxu3 %v1310_v26  ;;  %v1334_v41 = vld [vmem:[#allocation5 + $0x210] sm:$0xff] }
  0x41   :  { %237 = vmatpush.msrb.mxu0 %v1223_v50  ;;  %342 = vmatpush.msrb.mxu2 %v284_v28  ;;  %v312_v50 = vld [vmem:[#allocation5 + $0x290] sm:$0xff] }
  0x42   :  { %259 = vmatpush.msrb.mxu1 %v1208_v44  ;;  %362 = vmatpush.msrb.mxu3 %v1316_v29  ;;  %v1337_v44 = vld [vmem:[#allocation5 + $0x208] sm:$0xff] }
  0x43   :  { %238 = vmatpush.msrb.mxu0 %v1230_v53  ;;  %343 = vmatpush.msrb.mxu2 %v283_v31  ;;  %v310_v53 = vld [vmem:[#allocation5 + $0x280] sm:$0xff] }
  0x44   :  { %260 = vmatpush.msrb.mxu1 %v1217_v48  ;;  %363 = vmatpush.msrb.mxu3 %v1322_v32  ;;  %v314_v48 = vld [vmem:[#allocation5 + $0x2a0] sm:$0xff] }
  0x45   :  { %239 = vmatpush.msrb.mxu0 %v1238_v57  ;;  %344 = vmatpush.msrb.mxu2 %v282_v34 }
  0x46   :  { %261 = vmatpush.msrb.mxu1 %v1227_v52  ;;  %240 = vmatmul.f32.vlgmr.msrb.gmra.mxu0 %v194_v11  ;;  %v1033_v52 = vld [vmem:[#allocation5 + $0x700] ss:$0 sm:$0xff] }
  0x47   :  { %373 = vmatpush.msra.mxu0 %v1286_v12  ;;  %364 = vmatpush.msrb.mxu3 %v1328_v35 }
  0x48   :  { %262 = vmatpush.msrb.mxu1 %v1234_v55  ;;  %345 = vmatpush.msrb.mxu2 %v281_v37 }
  0x49   :  { %263 = vmatmul.f32.vlgmr.msrb.gmra.mxu1 %v198_v13  ;;  %374 = vmatpush.msra.mxu0 %v1294_v18 }
  0x4a   :  { %399 = vmatpush.msra.mxu1 %v293_v1  ;;  %365 = vmatpush.msrb.mxu3 %v1331_v38 }
  0x4b   :  { %375 = vmatpush.msra.mxu0 %v1300_v21  ;;  %346 = vmatpush.msrb.mxu2 %v280_v40 }
  0x4c   :  { %400 = vmatpush.msra.mxu1 %v292_v3  ;;  %366 = vmatpush.msrb.mxu3 %v1334_v41 }
  0x4d   :  { %376 = vmatpush.msra.mxu0 %v1307_v24  ;;  %347 = vmatpush.msrb.mxu2 %v279_v43 }
  0x4e   :  { %243 = vmatmul.f32.gmra.mxu0 %v196_v14  ;;  %401 = vmatpush.msra.mxu1 %v291_v5 }
  0x4f   :  { %377 = vmatpush.msra.mxu0 %v1313_v27  ;;  %367 = vmatpush.msrb.mxu3 %v1337_v44 }
  0x50   :  { %402 = vmatpush.msra.mxu1 %v290_v7  ;;  %348 = vmatpush.msrb.mxu2 %v278_v46 }
  0x51   :  { %266 = vmatmul.f32.gmra.mxu1 %v200_v15  ;;  %378 = vmatpush.msra.mxu0 %v1319_v30 }
  0x52   :  { %403 = vmatpush.msra.mxu1 %v289_v9  ;;  %368 = vmatpush.msrb.mxu3 %v1339_v47 }
  0x53   :  { %379 = vmatpush.msra.mxu0 %v1325_v33  ;;  %419 = vmatpush.msra.mxu2 %v1253_v2 }
  0x54   :  { %404 = vmatpush.msra.mxu1 %v288_v16  ;;  %439 = vmatpush.msra.mxu3 %v1286_v12 }
  0x55   :  { %380 = vmatpush.msra.mxu0 %v318_v36  ;;  %420 = vmatpush.msra.mxu2 %v1257_v4 }
  0x56   :  { %405 = vmatpush.msra.mxu1 %v287_v19  ;;  %440 = vmatpush.msra.mxu3 %v1294_v18 }
  0x57   :  { %381 = vmatpush.msra.mxu0 %v317_v39  ;;  %421 = vmatpush.msra.mxu2 %v1262_v6 }
  0x58   :  { %406 = vmatpush.msra.mxu1 %v286_v22  ;;  %441 = vmatpush.msra.mxu3 %v1300_v21 }
  0x59   :  { %382 = vmatpush.msra.mxu0 %v316_v42  ;;  %422 = vmatpush.msra.mxu2 %v1267_v8 }
  0x5a   :  { %407 = vmatpush.msra.mxu1 %v285_v25  ;;  %442 = vmatpush.msra.mxu3 %v1307_v24  ;;  %v474_v24 = vld [vmem:[#allocation5 + $0x4f8] sm:$0xff]  ;;  %v473_v25 = vld [vmem:[#allocation5 + $0x4f0] sm:$0xff] }
  0x5b   :  { %383 = vmatpush.msra.mxu0 %v315_v45  ;;  %423 = vmatpush.msra.mxu2 %v1272_v10 }
  0x5c   :  { %408 = vmatpush.msra.mxu1 %v284_v28  ;;  %443 = vmatpush.msra.mxu3 %v1313_v27  ;;  %v471_v27 = vld [vmem:[#allocation5 + $0x4e0] sm:$0xff]  ;;  %v470_v28 = vld [vmem:[#allocation5 + $0x4d8] sm:$0xff] }
  0x5d   :  { %384 = vmatpush.msra.mxu0 %v314_v48  ;;  %424 = vmatpush.msra.mxu2 %v1292_v17 }
  0x5e   :  { %409 = vmatpush.msra.mxu1 %v283_v31  ;;  %444 = vmatpush.msra.mxu3 %v1319_v30  ;;  %v468_v30 = vld [vmem:[#allocation5 + $0x4c8] sm:$0xff]  ;;  %v467_v31 = vld [vmem:[#allocation5 + $0x4c0] sm:$0xff] }
  0x5f   :  { %385 = vmatpush.msra.mxu0 %v313_v49  ;;  %425 = vmatpush.msra.mxu2 %v1298_v20 }
  0x60   :  { %410 = vmatpush.msra.mxu1 %v282_v34  ;;  %445 = vmatpush.msra.mxu3 %v1325_v33  ;;  %v465_v33 = vld [vmem:[#allocation5 + $0x4b0] sm:$0xff]  ;;  %v1034_v34 = vld [vmem:[#allocation5 + $0x701] ss:$0 sm:$0xff] }
  0x61   :  { %386 = vmatpush.msra.mxu0 %v312_v50  ;;  %426 = vmatpush.msra.mxu2 %v1304_v23 }
  0x62   :  { %411 = vmatpush.msra.mxu1 %v281_v37  ;;  %446 = vmatpush.msra.mxu3 %v318_v36  ;;  %v463_v37 = vld [vmem:[#allocation5 + $0x4a0] sm:$0xff] }
  0x63   :  { %387 = vmatpush.msra.mxu0 %v311_v51  ;;  %427 = vmatpush.msra.mxu2 %v1310_v26  ;;  %v472_v26 = vld [vmem:[#allocation5 + $0x4e8] sm:$0xff] }
  0x64   :  { %412 = vmatpush.msra.mxu1 %v280_v40  ;;  %447 = vmatpush.msra.mxu3 %v317_v39  ;;  %v462_v39 = vld [vmem:[#allocation5 + $0x498] sm:$0xff] }
  0x65   :  { %388 = vmatpush.msra.mxu0 %v310_v53  ;;  %428 = vmatpush.msra.mxu2 %v1316_v29  ;;  %v469_v29 = vld [vmem:[#allocation5 + $0x4d0] sm:$0xff] }
  0x66   :  { %413 = vmatpush.msra.mxu1 %v279_v43  ;;  %448 = vmatpush.msra.mxu3 %v316_v42  ;;  %v460_v42 = vld [vmem:[#allocation5 + $0x488] sm:$0xff] }
  0x67   :  { %429 = vmatpush.msra.mxu2 %v1322_v32  ;;  %491 = vmatpush.msrb.mxu0 %v474_v24  ;;  %v466_v32 = vld [vmem:[#allocation5 + $0x4b8] sm:$0xff] }
  0x68   :  { %414 = vmatpush.msra.mxu1 %v278_v46  ;;  %449 = vmatpush.msra.mxu3 %v315_v45 }
  0x69   :  { %430 = vmatpush.msra.mxu2 %v1328_v35  ;;  %492 = vmatpush.msrb.mxu0 %v473_v25  ;;  %v464_v35 = vld [vmem:[#allocation5 + $0x4a8] sm:$0xff] }
  0x6a   :  { %450 = vmatpush.msra.mxu3 %v314_v48  ;;  %532 = vmatpush.msrb.mxu1 %v474_v24 }
  0x6b   :  { %431 = vmatpush.msra.mxu2 %v1331_v38  ;;  %493 = vmatpush.msrb.mxu0 %v472_v26 }
  0x6c   :  { %451 = vmatpush.msra.mxu3 %v313_v49  ;;  %533 = vmatpush.msrb.mxu1 %v473_v25 }
  0x6d   :  { %432 = vmatpush.msra.mxu2 %v1334_v41  ;;  %494 = vmatpush.msrb.mxu0 %v471_v27  ;;  %v461_v41 = vld [vmem:[#allocation5 + $0x490] sm:$0xff] }
  0x6e   :  { %452 = vmatpush.msra.mxu3 %v312_v50  ;;  %534 = vmatpush.msrb.mxu1 %v472_v26 }
  0x6f   :  { %433 = vmatpush.msra.mxu2 %v1337_v44  ;;  %495 = vmatpush.msrb.mxu0 %v470_v28  ;;  %v459_v44 = vld [vmem:[#allocation5 + $0x480] sm:$0xff] }
  0x70   :  { %453 = vmatpush.msra.mxu3 %v311_v51  ;;  %535 = vmatpush.msrb.mxu1 %v471_v27 }
  0x71   :  { %434 = vmatpush.msra.mxu2 %v1339_v47  ;;  %496 = vmatpush.msrb.mxu0 %v469_v29 }
  0x72   :  { %454 = vmatpush.msra.mxu3 %v310_v53  ;;  %536 = vmatpush.msrb.mxu1 %v470_v28 }
  0x73   :  { %497 = vmatpush.msrb.mxu0 %v468_v30 }
  0x74   :  { %537 = vmatpush.msrb.mxu1 %v469_v29 }
  0x75   :  { %498 = vmatpush.msrb.mxu0 %v467_v31 }
  0x76   :  { %538 = vmatpush.msrb.mxu1 %v468_v30 }
  0x77   :  { %499 = vmatpush.msrb.mxu0 %v466_v32 }
  0x78   :  { %539 = vmatpush.msrb.mxu1 %v467_v31 }
  0x79   :  { %500 = vmatpush.msrb.mxu0 %v465_v33 }
  0x7a   :  { %540 = vmatpush.msrb.mxu1 %v466_v32 }
  0x7b   :  { %501 = vmatpush.msrb.mxu0 %v464_v35 }
  0x7c   :  { %541 = vmatpush.msrb.mxu1 %v465_v33 }
  0x7d   :  { %502 = vmatpush.msrb.mxu0 %v463_v37 }
  0x7e   :  { %542 = vmatpush.msrb.mxu1 %v464_v35 }
  0x7f   :  { %503 = vmatpush.msrb.mxu0 %v462_v39 }
  0x80   :  { %543 = vmatpush.msrb.mxu1 %v463_v37 }
  0x81   :  { %504 = vmatpush.msrb.mxu0 %v461_v41 }
  0x82   :  { %544 = vmatpush.msrb.mxu1 %v462_v39 }
  0x83   :  { %505 = vmatpush.msrb.mxu0 %v460_v42 }
  0x84   :  { %545 = vmatpush.msrb.mxu1 %v461_v41  ;;  %v1399_v41 = vld [vmem:[#allocation5 + $0x3c0] sm:$0xff] }
  0x85   :  { %506 = vmatpush.msrb.mxu0 %v459_v44 }
  0x86   :  { %546 = vmatpush.msrb.mxu1 %v460_v42  ;;  %v584_v42 = vld [vmem:[#allocation5 + $0x338] sm:$0xff] }
  0x88   :  { %547 = vmatpush.msrb.mxu1 %v459_v44  ;;  %v583_v44 = vld [vmem:[#allocation5 + $0x330] sm:$0xff] }
  0xa3   :  { %v137_v54 = vpop.f32.mrf.mxu0 }
  0xa4   :  { %v138_v55 = vadd.f32 %v1033_v52, %v137_v54 }
  0xa6   :  { %v160_v56 = vpop.f32.mrf.mxu1 }
  0xa7   :  { %v161_v57 = vadd.f32 %v160_v56, %v138_v55 }
  0xaa   :  { %v183_v58 = vpop.f32.mrf.mxu2 }
  0xab   :  { %v184_v59 = vadd.f32 %v183_v58, %v161_v57  ;;  %v140_v61 = vpop.f32.mrf.mxu0 }
  0xac   :  { %v141_v62 = vadd.f32 %v1033_v52, %v140_v61 }
  0xad   :  { %v270_v60 = vmax.f32 %v184_v59, 0.0  ;;  %v218_v4 = vpop.f32.mrf.mxu3 }
  0xae   :  { %v163_v63 = vpop.f32.mrf.mxu1  ;;  %v219_v8 = vadd.f32 %v1033_v52, %v218_v4  ;;  %v592_v4 = vld [vmem:[#allocation5 + $0x378] sm:$0xff] }
  0xaf   :  { %272 = vst [vmem:[#allocation3 + $0x1] sm:$0xff] %v270_v60  ;;  %v164_v0 = vadd.f32 %v163_v63, %v141_v62 }
  0xb2   :  { %v186_v1 = vpop.f32.mrf.mxu2 }
  0xb3   :  { %v187_v2 = vadd.f32 %v186_v1, %v164_v0 }
  0xb5   :  { %v271_v3 = vmax.f32 %v187_v2, 0.0  ;;  %v221_v11 = vpop.f32.mrf.mxu3 }
  0xb6   :  { %v222_v14 = vadd.f32 %v1033_v52, %v221_v11  ;;  %v1376_v11 = vld [vmem:[#allocation5 + $0x3e0] sm:$0xff] }
  0xb7   :  { %273 = vst [vmem:[#allocation3 + $0x9] sm:$0x3f] %v271_v3 }
  0xbe   :  { %v327_v5 = vld [vmem:[#allocation3] ss:$2 sm:$0x7f]  ;;  %v329_v6 = vld [vmem:[#allocation3 + $0x1] ss:$2 sm:$0x7f] }
  0xbf   :  { %349 = vmatmul.f32.vlgmr.msrb.gmra.mxu2 %v327_v5  ;;  %369 = vmatmul.f32.vlgmr.msrb.gmra.mxu3 %v329_v6  ;;  %v331_v7 = vld [vmem:[#allocation3 + $0x2] ss:$2 sm:$0x7f] }
  0xc0   :  { %389 = vmatmul.f32.vlgmr.msra.gmra.mxu0 %v331_v7  ;;  %v1368_v5 = vld [vmem:[#allocation5 + $0x3f8] sm:$0xff]  ;;  %v591_v6 = vld [vmem:[#allocation5 + $0x370] sm:$0xff]  ;;  %632 = vmatpush.msrb.mxu2 %v592_v4 }
  0xc1   :  { %652 = vmatpush.msrb.mxu3 %v1368_v5  ;;  %v1371_v7 = vld [vmem:[#allocation5 + $0x3f0] sm:$0xff] }
  0xc2   :  { %633 = vmatpush.msrb.mxu2 %v591_v6 }
  0xc3   :  { %v241_v9 = vpop.f32.mrf.mxu0  ;;  %653 = vmatpush.msrb.mxu3 %v1371_v7 }
  0xc4   :  { %v242_v10 = vadd.f32 %v241_v9, %v219_v8  ;;  %v590_v8 = vld [vmem:[#allocation5 + $0x368] sm:$0xff] }
  0xc5   :  { %v1373_v9 = vld [vmem:[#allocation5 + $0x3e8] sm:$0xff]  ;;  %634 = vmatpush.msrb.mxu2 %v590_v8 }
  0xc6   :  { %v264_v12 = vpop.f32.mrf.mxu1  ;;  %654 = vmatpush.msrb.mxu3 %v1373_v9 }
  0xc7   :  { %v265_v13 = vadd.f32 %v264_v12, %v242_v10  ;;  %v589_v10 = vld [vmem:[#allocation5 + $0x360] sm:$0xff]  ;;  %v588_v12 = vld [vmem:[#allocation5 + $0x358] sm:$0xff] }
  0xc8   :  { %635 = vmatpush.msrb.mxu2 %v589_v10  ;;  %655 = vmatpush.msrb.mxu3 %v1376_v11 }
  0xc9   :  { %v274_v15 = vmax.f32 %v265_v13, 0.0  ;;  %v1379_v13 = vld [vmem:[#allocation5 + $0x3d8] sm:$0xff] }
  0xca   :  { %636 = vmatpush.msrb.mxu2 %v588_v12  ;;  %656 = vmatpush.msrb.mxu3 %v1379_v13 }
  0xcb   :  { %276 = vst [vmem:[#allocation3 + $0x11] sm:$0xff] %v274_v15  ;;  %v244_v16 = vpop.f32.mrf.mxu0  ;;  %v587_v15 = vld [vmem:[#allocation5 + $0x350] sm:$0xff] }
  0xcc   :  { %v245_v17 = vadd.f32 %v244_v16, %v222_v14  ;;  %v1382_v16 = vld [vmem:[#allocation5 + $0x3d0] sm:$0xff]  ;;  %637 = vmatpush.msrb.mxu2 %v587_v15 }
  0xcd   :  { %657 = vmatpush.msrb.mxu3 %v1382_v16 }
  0xce   :  { %v267_v18 = vpop.f32.mrf.mxu1 }
  0xcf   :  { %v268_v19 = vadd.f32 %v267_v18, %v245_v17  ;;  %v586_v18 = vld [vmem:[#allocation5 + $0x348] sm:$0xff] }
  0xd0   :  { %638 = vmatpush.msrb.mxu2 %v586_v18 }
  0xd1   :  { %v275_v20 = vmax.f32 %v268_v19, 0.0  ;;  %v1385_v19 = vld [vmem:[#allocation5 + $0x3c8] sm:$0xff] }
  0xd2   :  { %658 = vmatpush.msrb.mxu3 %v1385_v19 }
  0xd3   :  { %277 = vst [vmem:[#allocation3 + $0x19] sm:$0x3f] %v275_v20 }
  0xd4   :  { %659 = vmatpush.msrb.mxu3 %v1399_v41 }
  0xda   :  { %v394_v21 = vld [vmem:[#allocation3 + $0x10] ss:$2 sm:$0x7f]  ;;  %v396_v22 = vld [vmem:[#allocation3 + $0x11] ss:$2 sm:$0x7f] }
  0xdb   :  { %415 = vmatmul.f32.vlgmr.msra.gmra.mxu1 %v394_v21  ;;  %435 = vmatmul.f32.vlgmr.msra.gmra.mxu2 %v396_v22  ;;  %v398_v23 = vld [vmem:[#allocation3 + $0x12] ss:$2 sm:$0x7f] }
  0xdc   :  { %455 = vmatmul.f32.vlgmr.msra.gmra.mxu3 %v398_v23  ;;  %698 = vmatpush.msra.mxu1 %v592_v4  ;;  %v614_v4 = vld [vmem:[#allocation5 + $0x428] sm:$0xff] }
  0xde   :  { %699 = vmatpush.msra.mxu1 %v591_v6  ;;  %v613_v6 = vld [vmem:[#allocation5 + $0x420] sm:$0xff] }
  0xe0   :  { %700 = vmatpush.msra.mxu1 %v590_v8  ;;  %v612_v8 = vld [vmem:[#allocation5 + $0x418] sm:$0xff] }
  0xe2   :  { %701 = vmatpush.msra.mxu1 %v589_v10 }
  0xe4   :  { %702 = vmatpush.msra.mxu1 %v588_v12  ;;  %v609_v12 = vld [vmem:[#allocation5 + $0x400] sm:$0xff] }
  0xe6   :  { %703 = vmatpush.msra.mxu1 %v587_v15 }
  0xe8   :  { %704 = vmatpush.msra.mxu1 %v586_v18  ;;  %v1444_v18 = vld [vmem:[#allocation5 + $0x570] sm:$0xff] }
 0x13d   :  { %v390_v45 = vpop.f32.mrf.mxu0 }
 0x142   :  { %v350_v36 = vpop.f32.mrf.mxu2  ;;  %v370_v40 = vpop.f32.mrf.mxu3 }
 0x143   :  { %v351_v38 = vadd.f32 %v1034_v34, %v350_v36 }
 0x145   :  { %v371_v43 = vadd.f32 %v370_v40, %v351_v38  ;;  %v585_v40 = vld [vmem:[#allocation5 + $0x340] sm:$0xff] }
 0x146   :  { %639 = vmatpush.msrb.mxu2 %v585_v40  ;;  %705 = vmatpush.msra.mxu1 %v585_v40  ;;  %v1478_v40 = vld [vmem:[#allocation5 + $0x548] sm:$0xff] }
 0x147   :  { %v391_v46 = vadd.f32 %v390_v45, %v371_v43  ;;  %v1402_v43 = vld [vmem:[#allocation5 + $0x3b8] sm:$0xff]  ;;  %v1405_v45 = vld [vmem:[#allocation5 + $0x3b0] sm:$0xff] }
 0x148   :  { %640 = vmatpush.msrb.mxu2 %v584_v42  ;;  %660 = vmatpush.msrb.mxu3 %v1402_v43 }
 0x149   :  { %v476_v47 = vsel %vm475_vm2, %v391_v46, 0.0  ;;  %706 = vmatpush.msra.mxu1 %v584_v42 }
 0x14a   :  { %v477_v48 = vrot.slane %v476_v47, 4  ;;  %641 = vmatpush.msrb.mxu2 %v583_v44  ;;  %661 = vmatpush.msrb.mxu3 %v1405_v45 }
 0x14b   :  { %707 = vmatpush.msra.mxu1 %v583_v44  ;;  %v1484_v44 = vld [vmem:[#allocation5 + $0x540] sm:$0xff] }
 0x14c   :  { %v478_v51 = vadd.f32 %v477_v48, %v476_v47  ;;  %v1408_v47 = vld [vmem:[#allocation5 + $0x3a8] sm:$0xff]  ;;  %v581_v48 = vld [vmem:[#allocation5 + $0x320] sm:$0xff] }
 0x14d   :  { %662 = vmatpush.msrb.mxu3 %v1408_v47 }
 0x14e   :  { %v479_v56 = vrot.slane %v478_v51, 2 }
 0x150   :  { %v480_v59 = vadd.f32 %v479_v56, %v478_v51  ;;  %v580_v51 = vld [vmem:[#allocation5 + $0x318] sm:$0xff]  ;;  %v622_v56 = vld [vmem:[#allocation5 + $0x468] sm:$0xff] }
 0x152   :  { %v481_v62 = vrot.slane %v480_v59, 1 }
 0x154   :  { %v482_v2 = vadd.f32 %v481_v62, %v480_v59  ;;  %v621_v59 = vld [vmem:[#allocation5 + $0x460] sm:$0xff]  ;;  %v620_v62 = vld [vmem:[#allocation5 + $0x458] sm:$0xff] }
 0x158   :  { %v416_v49 = vpop.f32.mrf.mxu1 }
 0x159   :  { %v417_v50 = vadd.f32 %v1034_v34, %v416_v49  ;;  %v1411_v49 = vld [vmem:[#allocation5 + $0x3a0] sm:$0xff] }
 0x15a   :  { %663 = vmatpush.msrb.mxu3 %v1411_v49 }
 0x15e   :  { %v436_v52 = vpop.f32.mrf.mxu2 }
 0x15f   :  { %v437_v53 = vadd.f32 %v436_v52, %v417_v50  ;;  %v456_v54 = vpop.f32.mrf.mxu3  ;;  %v624_v50 = vld [vmem:[#allocation5 + $0x478] sm:$0xff] }
 0x160   :  { %672 = vmatpush.msra.mxu0 %v624_v50  ;;  %v1414_v52 = vld [vmem:[#allocation5 + $0x398] sm:$0xff] }
 0x161   :  { %v457_v55 = vadd.f32 %v456_v54, %v437_v53  ;;  %664 = vmatpush.msrb.mxu3 %v1414_v52  ;;  %v623_v53 = vld [vmem:[#allocation5 + $0x470] sm:$0xff] }
 0x162   :  { %673 = vmatpush.msra.mxu0 %v623_v53  ;;  %v579_v54 = vld [vmem:[#allocation5 + $0x310] sm:$0xff] }
 0x163   :  { %v483_v57 = vsel %vm475_vm2, %v457_v55, 0.0 }
 0x164   :  { %v484_v58 = vrot.slane %v483_v57, 4  ;;  %674 = vmatpush.msra.mxu0 %v622_v56 }
 0x166   :  { %v485_v60 = vadd.f32 %v484_v58, %v483_v57  ;;  %v578_v57 = vld [vmem:[#allocation5 + $0x308] sm:$0xff]  ;;  %675 = vmatpush.msra.mxu0 %v621_v59 }
 0x167   :  { %v1420_v58 = vld [vmem:[#allocation5 + $0x388] sm:$0xff] }
 0x168   :  { %v486_v61 = vrot.slane %v485_v60, 2  ;;  %676 = vmatpush.msra.mxu0 %v620_v62 }
 0x16a   :  { %v487_v63 = vadd.f32 %v486_v61, %v485_v60  ;;  %v577_v60 = vld [vmem:[#allocation5 + $0x300] sm:$0xff] }
 0x16b   :  { %v1423_v61 = vld [vmem:[#allocation5 + $0x380] sm:$0xff] }
 0x16c   :  { %v488_v0 = vrot.slane %v487_v63, 1 }
 0x16e   :  { %v489_v1 = vadd.f32 %v488_v0, %v487_v63  ;;  %v619_v63 = vld [vmem:[#allocation5 + $0x450] sm:$0xff]  ;;  %v618_v0 = vld [vmem:[#allocation5 + $0x448] sm:$0xff] }
 0x16f   :  { %677 = vmatpush.msra.mxu0 %v619_v63 }
 0x170   :  { %v490_v3 = vadd.f32 %v489_v1, %v482_v2  ;;  %v617_v1 = vld [vmem:[#allocation5 + $0x440] sm:$0xff]  ;;  %v616_v2 = vld [vmem:[#allocation5 + $0x438] sm:$0xff] }
 0x171   :  { %678 = vmatpush.msra.mxu0 %v618_v0 }
 0x172   :  { %507 = vmatmul.f32.vlgmr.msrb.gmra.mxu0 %v490_v3  ;;  %v615_v3 = vld [vmem:[#allocation5 + $0x430] sm:$0xff] }
 0x173   :  { %679 = vmatpush.msra.mxu0 %v617_v1 }
 0x175   :  { %680 = vmatpush.msra.mxu0 %v616_v2 }
 0x177   :  { %681 = vmatpush.msra.mxu0 %v615_v3 }
 0x179   :  { %682 = vmatpush.msra.mxu0 %v614_v4 }
 0x17b   :  { %683 = vmatpush.msra.mxu0 %v613_v6 }
 0x17d   :  { %684 = vmatpush.msra.mxu0 %v612_v8 }
 0x1ef   :  { %v508_v14 = vpop.f32.mrf.mxu0 }
 0x1f0   :  { %v511_v17 = vmul.f32 0.010204081, %v508_v14 }
 0x1f2   :  { %v512_v20 = vperm.slane %v511_v17, 0  ;;  %v1442_v17 = vld [vmem:[#allocation5 + $0x578] sm:$0xff] }
 0x1f4   :  { %v1388_v21 = vsub.f32 %v391_v46, %v512_v20  ;;  %v1390_v22 = vsub.f32 %v457_v55, %v512_v20  ;;  %v582_v46 = vld [vmem:[#allocation5 + $0x328] sm:$0xff]  ;;  %v1417_v55 = vld [vmem:[#allocation5 + $0x390] sm:$0xff] }
 0x1f5   :  { %642 = vmatpush.msrb.mxu2 %v582_v46  ;;  %708 = vmatpush.msra.mxu1 %v582_v46  ;;  %v1490_v46 = vld [vmem:[#allocation5 + $0x538] sm:$0xff] }
 0x1f6   :  { %v515_v23 = vmul.f32 %v1388_v21, %v1388_v21  ;;  %v523_v24 = vmul.f32 %v1390_v22, %v1390_v22  ;;  %665 = vmatpush.msrb.mxu3 %v1417_v55 }
 0x1f7   :  { %643 = vmatpush.msrb.mxu2 %v581_v48  ;;  %709 = vmatpush.msra.mxu1 %v581_v48  ;;  %v1496_v48 = vld [vmem:[#allocation5 + $0x530] sm:$0xff] }
 0x1f8   :  { %v516_v25 = vsel %vm475_vm2, %v515_v23, 0.0  ;;  %v524_v26 = vsel %vm475_vm2, %v523_v24, 0.0  ;;  %666 = vmatpush.msrb.mxu3 %v1420_v58  ;;  %v1449_v23 = vld [vmem:[#allocation5 + $0x5f0] sm:$0xff]  ;;  %v1452_v24 = vld [vmem:[#allocation5 + $0x568] sm:$0xff] }
 0x1f9   :  { %v517_v27 = vrot.slane %v516_v25, 4  ;;  %v525_v28 = vrot.slane %v524_v26, 4  ;;  %644 = vmatpush.msrb.mxu2 %v580_v51  ;;  %710 = vmatpush.msra.mxu1 %v580_v51  ;;  %v1505_v51 = vld [vmem:[#allocation5 + $0x5a8] sm:$0xff] }
 0x1fa   :  { %667 = vmatpush.msrb.mxu3 %v1423_v61 }
 0x1fb   :  { %v518_v29 = vadd.f32 %v517_v27, %v516_v25  ;;  %v526_v30 = vadd.f32 %v525_v28, %v524_v26  ;;  %645 = vmatpush.msrb.mxu2 %v579_v54  ;;  %711 = vmatpush.msra.mxu1 %v579_v54  ;;  %v553_v25 = vld [vmem:[#allocation5 + $0x703] sm:$0x1]  ;;  %v1455_v27 = vld [vmem:[#allocation5 + $0x5e8] sm:$0xff]  ;;  %v1514_v54 = vld [vmem:[#allocation5 + $0x518] sm:$0xff] }
 0x1fc   :  { %738 = vmatpush.msra.mxu3 %v624_v50  ;;  %v1458_v28 = vld [vmem:[#allocation5 + $0x560] sm:$0xff]  ;;  %v1502_v50 = vld [vmem:[#allocation5 + $0x528] sm:$0xff] }
 0x1fd   :  { %v519_v31 = vrot.slane %v518_v29, 2  ;;  %v527_v32 = vrot.slane %v526_v30, 2  ;;  %646 = vmatpush.msrb.mxu2 %v578_v57  ;;  %712 = vmatpush.msra.mxu1 %v578_v57 }
 0x1fe   :  { %739 = vmatpush.msra.mxu3 %v623_v53  ;;  %v1511_v53 = vld [vmem:[#allocation5 + $0x678] sm:$0xff] }
 0x1ff   :  { %v520_v33 = vadd.f32 %v519_v31, %v518_v29  ;;  %v528_v34 = vadd.f32 %v527_v32, %v526_v30  ;;  %647 = vmatpush.msrb.mxu2 %v577_v60  ;;  %713 = vmatpush.msra.mxu1 %v577_v60  ;;  %v1461_v30 = vld [vmem:[#allocation5 + $0x5e0] sm:$0xff]  ;;  %v1464_v32 = vld [vmem:[#allocation5 + $0x558] sm:$0xff]  ;;  %v1519_v60 = vld [vmem:[#allocation5 + $0x670] sm:$0xff] }
 0x200   :  { %740 = vmatpush.msra.mxu3 %v622_v56 }
 0x201   :  { %v521_v35 = vrot.slane %v520_v33, 1  ;;  %v529_v36 = vrot.slane %v528_v34, 1  ;;  %718 = vmatpush.msra.mxu2 %v1368_v5 }
 0x202   :  { %741 = vmatpush.msra.mxu3 %v621_v59 }
 0x203   :  { %v522_v37 = vadd.f32 %v521_v35, %v520_v33  ;;  %v530_v38 = vadd.f32 %v529_v36, %v528_v34  ;;  %719 = vmatpush.msra.mxu2 %v1371_v7  ;;  %v1467_v33 = vld [vmem:[#allocation5 + $0x5d8] sm:$0xff]  ;;  %v1035_v35 = vld [vmem:[#allocation5 + $0x704] ss:$0 sm:$0xff]  ;;  %v1470_v36 = vld [vmem:[#allocation5 + $0x550] sm:$0xff] }
 0x204   :  { %742 = vmatpush.msra.mxu3 %v620_v62  ;;  %v1525_v62 = vld [vmem:[#allocation5 + $0x598] sm:$0xff] }
 0x205   :  { %v531_v39 = vadd.f32 %v530_v38, %v522_v37  ;;  %720 = vmatpush.msra.mxu2 %v1373_v9  ;;  %v611_v9 = vld [vmem:[#allocation5 + $0x410] sm:$0xff] }
 0x206   :  { %743 = vmatpush.msra.mxu3 %v619_v63  ;;  %685 = vmatpush.msra.mxu0 %v611_v9  ;;  %v1473_v37 = vld [vmem:[#allocation5 + $0x5d0] sm:$0xff]  ;;  %v1527_v63 = vld [vmem:[#allocation5 + $0x668] sm:$0xff] }
 0x207   :  { %548 = vmatmul.f32.vlgmr.msrb.gmra.mxu1 %v531_v39  ;;  %721 = vmatpush.msra.mxu2 %v1376_v11  ;;  %v610_v11 = vld [vmem:[#allocation5 + $0x408] sm:$0xff] }
 0x208   :  { %744 = vmatpush.msra.mxu3 %v618_v0  ;;  %686 = vmatpush.msra.mxu0 %v610_v11  ;;  %v1530_v0 = vld [vmem:[#allocation5 + $0x508] sm:$0xff] }
 0x209   :  { %722 = vmatpush.msra.mxu2 %v1379_v13 }
 0x20a   :  { %745 = vmatpush.msra.mxu3 %v617_v1  ;;  %687 = vmatpush.msra.mxu0 %v609_v12  ;;  %v1534_v1 = vld [vmem:[#allocation5 + $0x590] sm:$0xff] }
 0x20b   :  { %723 = vmatpush.msra.mxu2 %v1382_v16 }
 0x20c   :  { %746 = vmatpush.msra.mxu3 %v616_v2  ;;  %826 = vmatpush.msrb.mxu0 %v1442_v17  ;;  %v1538_v2 = vld [vmem:[#allocation5 + $0x660] sm:$0xff] }
 0x20d   :  { %724 = vmatpush.msra.mxu2 %v1385_v19  ;;  %v1446_v19 = vld [vmem:[#allocation5 + $0x5f8] sm:$0xff] }
 0x20e   :  { %747 = vmatpush.msra.mxu3 %v615_v3  ;;  %850 = vmatpush.msrb.mxu1 %v1446_v19  ;;  %v1541_v3 = vld [vmem:[#allocation5 + $0x500] sm:$0xff] }
 0x20f   :  { %725 = vmatpush.msra.mxu2 %v1399_v41  ;;  %827 = vmatpush.msrb.mxu0 %v1444_v18  ;;  %v1481_v41 = vld [vmem:[#allocation5 + $0x5c8] sm:$0xff] }
 0x210   :  { %748 = vmatpush.msra.mxu3 %v614_v4  ;;  %851 = vmatpush.msrb.mxu1 %v1449_v23  ;;  %v1543_v4 = vld [vmem:[#allocation5 + $0x588] sm:$0xff] }
 0x211   :  { %726 = vmatpush.msra.mxu2 %v1402_v43  ;;  %828 = vmatpush.msrb.mxu0 %v1452_v24 }
 0x212   :  { %749 = vmatpush.msra.mxu3 %v613_v6  ;;  %852 = vmatpush.msrb.mxu1 %v1455_v27 }
 0x213   :  { %727 = vmatpush.msra.mxu2 %v1405_v45  ;;  %829 = vmatpush.msrb.mxu0 %v1458_v28  ;;  %v1487_v45 = vld [vmem:[#allocation5 + $0x5c0] sm:$0xff] }
 0x214   :  { %750 = vmatpush.msra.mxu3 %v612_v8  ;;  %853 = vmatpush.msrb.mxu1 %v1461_v30  ;;  %v776_v8 = vld [vmem:[#allocation5 + $0x580] sm:$0xff] }
 0x215   :  { %728 = vmatpush.msra.mxu2 %v1408_v47  ;;  %830 = vmatpush.msrb.mxu0 %v1464_v32  ;;  %v1493_v47 = vld [vmem:[#allocation5 + $0x5b8] sm:$0xff] }
 0x216   :  { %751 = vmatpush.msra.mxu3 %v611_v9  ;;  %854 = vmatpush.msrb.mxu1 %v1467_v33  ;;  %v802_v9 = vld [vmem:[#allocation5 + $0x650] sm:$0xff] }
 0x217   :  { %729 = vmatpush.msra.mxu2 %v1411_v49  ;;  %831 = vmatpush.msrb.mxu0 %v1470_v36  ;;  %v1499_v49 = vld [vmem:[#allocation5 + $0x5b0] sm:$0xff] }
 0x218   :  { %752 = vmatpush.msra.mxu3 %v610_v11  ;;  %855 = vmatpush.msrb.mxu1 %v1473_v37  ;;  %v800_v11 = vld [vmem:[#allocation5 + $0x640] sm:$0xff] }
 0x219   :  { %730 = vmatpush.msra.mxu2 %v1414_v52  ;;  %832 = vmatpush.msrb.mxu0 %v1478_v40  ;;  %v1508_v52 = vld [vmem:[#allocation5 + $0x520] sm:$0xff] }
 0x21a   :  { %753 = vmatpush.msra.mxu3 %v609_v12  ;;  %856 = vmatpush.msrb.mxu1 %v1481_v41  ;;  %v799_v12 = vld [vmem:[#allocation5 + $0x638] sm:$0xff] }
 0x21b   :  { %731 = vmatpush.msra.mxu2 %v1417_v55  ;;  %833 = vmatpush.msrb.mxu0 %v1484_v44  ;;  %v1516_v55 = vld [vmem:[#allocation5 + $0x5a0] sm:$0xff] }
 0x21c   :  { %857 = vmatpush.msrb.mxu1 %v1487_v45 }
 0x21d   :  { %732 = vmatpush.msra.mxu2 %v1420_v58  ;;  %834 = vmatpush.msrb.mxu0 %v1490_v46 }
 0x21e   :  { %858 = vmatpush.msrb.mxu1 %v1493_v47 }
 0x21f   :  { %733 = vmatpush.msra.mxu2 %v1423_v61  ;;  %835 = vmatpush.msrb.mxu0 %v1496_v48  ;;  %v1521_v61 = vld [vmem:[#allocation5 + $0x510] sm:$0xff] }
 0x220   :  { %859 = vmatpush.msrb.mxu1 %v1499_v49 }
 0x221   :  { %836 = vmatpush.msrb.mxu0 %v1502_v50 }
 0x222   :  { %860 = vmatpush.msrb.mxu1 %v1505_v51 }
 0x223   :  { %837 = vmatpush.msrb.mxu0 %v1508_v52 }
 0x224   :  { %861 = vmatpush.msrb.mxu1 %v1516_v55 }
 0x225   :  { %838 = vmatpush.msrb.mxu0 %v1514_v54 }
 0x226   :  { %862 = vmatpush.msrb.mxu1 %v1525_v62 }
 0x227   :  { %839 = vmatpush.msrb.mxu0 %v1521_v61 }
 0x228   :  { %863 = vmatpush.msrb.mxu1 %v1534_v1 }
 0x229   :  { %840 = vmatpush.msrb.mxu0 %v1530_v0 }
 0x22a   :  { %864 = vmatpush.msrb.mxu1 %v1543_v4 }
 0x22b   :  { %841 = vmatpush.msrb.mxu0 %v1541_v3 }
 0x22c   :  { %865 = vmatpush.msrb.mxu1 %v776_v8 }
 0x284   :  { %v549_v5 = vpop.f32.mrf.mxu1 }
 0x285   :  { %v552_v7 = vmul.f32 0.010204081, %v549_v5 }
 0x287   :  { %v554_v10 = vadd.f32 1e-05, %v552_v7  ;;  %v1546_v7 = vld [vmem:[#allocation5 + $0x658] sm:$0xff] }
 0x289   :  { %1037 = vrsqrt.f32 %v554_v10  ;;  %vm561_vm4 = vweird.f32 %v554_v10 }
 0x28f   :  { %v1038_v13 = vpop.eup %1037 }
 0x290   :  { %v556_v14 = vmul.f32 %v1038_v13, %v554_v10  ;;  %vm562_vm3 = vweird.f32 %v1038_v13  ;;  %v801_v10 = vld [vmem:[#allocation5 + $0x648] sm:$0xff] }
 0x291   :  { %vm563_vm5 = vmor %vm561_vm4, %vm562_vm3 }
 0x292   :  { %v557_v15 = vmul.f32 %v1038_v13, %v556_v14  ;;  %v797_v14 = vld [vmem:[#allocation5 + $0x628] sm:$0xff] }
 0x294   :  { %v558_v16 = vmul.f32 0.5, %v557_v15  ;;  %v796_v15 = vld [vmem:[#allocation5 + $0x620] sm:$0xff] }
 0x296   :  { %v559_v20 = vsub.f32 1.5, %v558_v16  ;;  %v795_v16 = vld [vmem:[#allocation5 + $0x618] sm:$0xff] }
 0x298   :  { %v560_v26 = vmul.f32 %v1038_v13, %v559_v20  ;;  %v823_v20 = vld [vmem:[#allocation5 + $0x6f8] sm:$0xff] }
 0x29a   :  { %v564_v29 = vsel %vm563_vm5, %v1038_v13, %v560_v26  ;;  %v798_v13 = vld [vmem:[#allocation5 + $0x630] sm:$0xff]  ;;  %v819_v26 = vld [vmem:[#allocation5 + $0x6d8] sm:$0xff] }
 0x29b   :  { %v565_v31 = vmul.f32 %v564_v29, %v553_v25  ;;  %v820_v25 = vld [vmem:[#allocation5 + $0x6e0] sm:$0xff] }
 0x29c   :  { %v1036_v29 = vld [vmem:[#allocation5 + $0x702] ss:$0 sm:$0xff] }
 0x29d   :  { %v567_v34 = vperm.slane %v565_v31, 0 }
 0x29f   :  { %v568_v38 = vmul.f32 %v567_v34, %v1388_v21  ;;  %v573_v39 = vmul.f32 %v567_v34, %v1390_v22  ;;  %v815_v34 = vld [vmem:[#allocation5 + $0x6b8] sm:$0xff] }
 0x2a1   :  { %v570_v42 = vadd.f32 %v1035_v35, %v568_v38  ;;  %v574_v43 = vadd.f32 %v1035_v35, %v573_v39 }
 0x2a3   :  { %v571_v21 = vmax.f32 %v570_v42, 0.0  ;;  %v575_v22 = vmax.f32 %v574_v43, 0.0  ;;  %v812_v43 = vld [vmem:[#allocation5 + $0x6a0] sm:$0xff] }
 0x2a5   :  { %572 = vst [vmem:[#allocation4] sm:$0x7f] %v571_v21 }
 0x2a6   :  { %576 = vst [vmem:[#allocation4 + $0x8] sm:$0x7f] %v575_v22 }
 0x2ac   :  { %v626_v56 = vld [vmem:[#allocation4] ss:$2 sm:$0x7]  ;;  %v628_v57 = vld [vmem:[#allocation4 + $0x1] ss:$2 sm:$0x7] }
 0x2ad   :  { %648 = vmatmul.f32.vlgmr.msrb.gmra.mxu2 %v626_v56  ;;  %668 = vmatmul.f32.vlgmr.msrb.gmra.mxu3 %v628_v57  ;;  %v630_v58 = vld [vmem:[#allocation4 + $0x2] ss:$2 sm:$0x7]  ;;  %v693_v59 = vld [vmem:[#allocation4 + $0x8] ss:$2 sm:$0x7] }
 0x2ae   :  { %688 = vmatmul.f32.vlgmr.msra.gmra.mxu0 %v630_v58  ;;  %714 = vmatmul.f32.vlgmr.msra.gmra.mxu1 %v693_v59  ;;  %v695_v5 = vld [vmem:[#allocation4 + $0x9] ss:$2 sm:$0x7]  ;;  %v697_v6 = vld [vmem:[#allocation4 + $0xa] ss:$2 sm:$0x7] }
 0x2af   :  { %873 = vmatpush.msrb.mxu2 %v1511_v53  ;;  %917 = vmatpush.msra.mxu0 %v1442_v17  ;;  %v794_v17 = vld [vmem:[#allocation5 + $0x610] sm:$0xff] }
 0x2b0   :  { %941 = vmatpush.msra.mxu1 %v1446_v19  ;;  %v792_v19 = vld [vmem:[#allocation5 + $0x600] sm:$0xff]  ;;  %895 = vmatpush.msrb.mxu3 %v823_v20 }
 0x2b1   :  { %874 = vmatpush.msrb.mxu2 %v1519_v60  ;;  %918 = vmatpush.msra.mxu0 %v1444_v18  ;;  %v793_v18 = vld [vmem:[#allocation5 + $0x608] sm:$0xff] }
 0x2b2   :  { %942 = vmatpush.msra.mxu1 %v1449_v23  ;;  %v822_v23 = vld [vmem:[#allocation5 + $0x6f0] sm:$0xff] }
 0x2b3   :  { %875 = vmatpush.msrb.mxu2 %v1527_v63  ;;  %919 = vmatpush.msra.mxu0 %v1452_v24  ;;  %v821_v24 = vld [vmem:[#allocation5 + $0x6e8] sm:$0xff] }
 0x2b4   :  { %943 = vmatpush.msra.mxu1 %v1455_v27  ;;  %896 = vmatpush.msrb.mxu3 %v822_v23  ;;  %v818_v27 = vld [vmem:[#allocation5 + $0x6d0] sm:$0xff] }
 0x2b5   :  { %734 = vmatmul.f32.vlgmr.msra.gmra.mxu2 %v695_v5  ;;  %754 = vmatmul.f32.vlgmr.msra.gmra.mxu3 %v697_v6  ;;  %v825_v6 = vld [vmem:[#allocation5 + $0x706] sm:$0x1] }
 0x2b6   :  { %876 = vmatpush.msrb.mxu2 %v1538_v2  ;;  %920 = vmatpush.msra.mxu0 %v1458_v28  ;;  %v817_v28 = vld [vmem:[#allocation5 + $0x6c8] sm:$0xff] }
 0x2b7   :  { %944 = vmatpush.msra.mxu1 %v1461_v30  ;;  %897 = vmatpush.msrb.mxu3 %v821_v24  ;;  %v816_v30 = vld [vmem:[#allocation5 + $0x6c0] sm:$0xff] }
 0x2b8   :  { %877 = vmatpush.msrb.mxu2 %v1546_v7  ;;  %921 = vmatpush.msra.mxu0 %v1464_v32 }
 0x2b9   :  { %945 = vmatpush.msra.mxu1 %v1467_v33  ;;  %898 = vmatpush.msrb.mxu3 %v820_v25 }
 0x2ba   :  { %878 = vmatpush.msrb.mxu2 %v802_v9  ;;  %922 = vmatpush.msra.mxu0 %v1470_v36  ;;  %v814_v36 = vld [vmem:[#allocation5 + $0x6b0] sm:$0xff] }
 0x2bb   :  { %946 = vmatpush.msra.mxu1 %v1473_v37  ;;  %899 = vmatpush.msrb.mxu3 %v819_v26 }
 0x2bc   :  { %879 = vmatpush.msrb.mxu2 %v801_v10  ;;  %923 = vmatpush.msra.mxu0 %v1478_v40  ;;  %v813_v40 = vld [vmem:[#allocation5 + $0x6a8] sm:$0xff] }
 0x2bd   :  { %947 = vmatpush.msra.mxu1 %v1481_v41  ;;  %900 = vmatpush.msrb.mxu3 %v818_v27 }
 0x2be   :  { %880 = vmatpush.msrb.mxu2 %v800_v11  ;;  %924 = vmatpush.msra.mxu0 %v1484_v44 }
 0x2bf   :  { %948 = vmatpush.msra.mxu1 %v1487_v45  ;;  %901 = vmatpush.msrb.mxu3 %v817_v28 }
 0x2c0   :  { %881 = vmatpush.msrb.mxu2 %v799_v12  ;;  %925 = vmatpush.msra.mxu0 %v1490_v46  ;;  %v811_v46 = vld [vmem:[#allocation5 + $0x698] sm:$0xff] }
 0x2c1   :  { %949 = vmatpush.msra.mxu1 %v1493_v47  ;;  %902 = vmatpush.msrb.mxu3 %v816_v30 }
 0x2c2   :  { %882 = vmatpush.msrb.mxu2 %v798_v13  ;;  %926 = vmatpush.msra.mxu0 %v1496_v48 }
 0x2c3   :  { %950 = vmatpush.msra.mxu1 %v1499_v49  ;;  %903 = vmatpush.msrb.mxu3 %v815_v34  ;;  %v810_v49 = vld [vmem:[#allocation5 + $0x690] sm:$0xff] }
 0x2c4   :  { %883 = vmatpush.msrb.mxu2 %v797_v14  ;;  %927 = vmatpush.msra.mxu0 %v1502_v50 }
 0x2c5   :  { %951 = vmatpush.msra.mxu1 %v1505_v51  ;;  %904 = vmatpush.msrb.mxu3 %v814_v36  ;;  %v809_v51 = vld [vmem:[#allocation5 + $0x688] sm:$0xff] }
 0x2c6   :  { %884 = vmatpush.msrb.mxu2 %v796_v15  ;;  %928 = vmatpush.msra.mxu0 %v1508_v52  ;;  %v808_v52 = vld [vmem:[#allocation5 + $0x680] sm:$0xff] }
 0x2c7   :  { %952 = vmatpush.msra.mxu1 %v1516_v55  ;;  %905 = vmatpush.msrb.mxu3 %v813_v40  ;;  %v824_v55 = vld [vmem:[#allocation5 + $0x705] sm:$0x1] }
 0x2c8   :  { %885 = vmatpush.msrb.mxu2 %v795_v16  ;;  %929 = vmatpush.msra.mxu0 %v1514_v54 }
 0x2c9   :  { %953 = vmatpush.msra.mxu1 %v1525_v62  ;;  %906 = vmatpush.msrb.mxu3 %v812_v43 }
 0x2ca   :  { %886 = vmatpush.msrb.mxu2 %v794_v17  ;;  %930 = vmatpush.msra.mxu0 %v1521_v61 }
 0x2cb   :  { %954 = vmatpush.msra.mxu1 %v1534_v1  ;;  %907 = vmatpush.msrb.mxu3 %v811_v46 }
 0x2cc   :  { %887 = vmatpush.msrb.mxu2 %v793_v18  ;;  %931 = vmatpush.msra.mxu0 %v1530_v0 }
 0x2cd   :  { %955 = vmatpush.msra.mxu1 %v1543_v4  ;;  %908 = vmatpush.msrb.mxu3 %v810_v49 }
 0x2ce   :  { %888 = vmatpush.msrb.mxu2 %v792_v19  ;;  %932 = vmatpush.msra.mxu0 %v1541_v3 }
 0x2cf   :  { %956 = vmatpush.msra.mxu1 %v776_v8  ;;  %909 = vmatpush.msrb.mxu3 %v809_v51 }
 0x2d0   :  { %964 = vmatpush.msra.mxu2 %v1511_v53 }
 0x2d1   :  { %910 = vmatpush.msrb.mxu3 %v808_v52 }
 0x2d2   :  { %965 = vmatpush.msra.mxu2 %v1519_v60 }
 0x2d3   :  { %986 = vmatpush.msra.mxu3 %v823_v20 }
 0x2d4   :  { %966 = vmatpush.msra.mxu2 %v1527_v63 }
 0x2d5   :  { %987 = vmatpush.msra.mxu3 %v822_v23 }
 0x2d6   :  { %967 = vmatpush.msra.mxu2 %v1538_v2 }
 0x2d7   :  { %988 = vmatpush.msra.mxu3 %v821_v24 }
 0x2d8   :  { %968 = vmatpush.msra.mxu2 %v1546_v7 }
 0x2d9   :  { %989 = vmatpush.msra.mxu3 %v820_v25 }
 0x2da   :  { %969 = vmatpush.msra.mxu2 %v802_v9 }
 0x2db   :  { %990 = vmatpush.msra.mxu3 %v819_v26 }
 0x2dc   :  { %970 = vmatpush.msra.mxu2 %v801_v10 }
 0x2dd   :  { %991 = vmatpush.msra.mxu3 %v818_v27 }
 0x2de   :  { %971 = vmatpush.msra.mxu2 %v800_v11 }
 0x2df   :  { %992 = vmatpush.msra.mxu3 %v817_v28 }
 0x2e0   :  { %972 = vmatpush.msra.mxu2 %v799_v12 }
 0x2e1   :  { %993 = vmatpush.msra.mxu3 %v816_v30 }
 0x2e2   :  { %973 = vmatpush.msra.mxu2 %v798_v13 }
 0x2e3   :  { %994 = vmatpush.msra.mxu3 %v815_v34 }
 0x2e4   :  { %974 = vmatpush.msra.mxu2 %v797_v14 }
 0x2e5   :  { %995 = vmatpush.msra.mxu3 %v814_v36 }
 0x2e6   :  { %975 = vmatpush.msra.mxu2 %v796_v15 }
 0x2e7   :  { %996 = vmatpush.msra.mxu3 %v813_v40 }
 0x2e8   :  { %976 = vmatpush.msra.mxu2 %v795_v16 }
 0x2e9   :  { %997 = vmatpush.msra.mxu3 %v812_v43 }
 0x2ea   :  { %977 = vmatpush.msra.mxu2 %v794_v17 }
 0x2eb   :  { %998 = vmatpush.msra.mxu3 %v811_v46 }
 0x2ec   :  { %978 = vmatpush.msra.mxu2 %v793_v18 }
 0x2ed   :  { %999 = vmatpush.msra.mxu3 %v810_v49 }
 0x2ee   :  { %979 = vmatpush.msra.mxu2 %v792_v19 }
 0x2ef   :  { %1000 = vmatpush.msra.mxu3 %v809_v51 }
 0x2f1   :  { %1001 = vmatpush.msra.mxu3 %v808_v52 }
 0x32b   :  { %v689_v37 = vpop.f32.mrf.mxu0  ;;  %v715_v38 = vpop.f32.mrf.mxu1 }
 0x32c   :  { %v716_v41 = vadd.f32 %v1036_v29, %v715_v38 }
 0x330   :  { %v649_v31 = vpop.f32.mrf.mxu2  ;;  %v669_v32 = vpop.f32.mrf.mxu3 }
 0x331   :  { %v650_v33 = vadd.f32 %v1036_v29, %v649_v31 }
 0x333   :  { %v670_v35 = vadd.f32 %v669_v32, %v650_v33 }
 0x335   :  { %v690_v39 = vadd.f32 %v689_v37, %v670_v35 }
 0x337   :  { %v758_v42 = vmax.f32 %v690_v39, 0.0 }
 0x338   :  { %v735_v44 = vpop.f32.mrf.mxu2  ;;  %v755_v47 = vpop.f32.mrf.mxu3 }
 0x339   :  { %v736_v45 = vadd.f32 %v735_v44, %v716_v41  ;;  %842 = vmatmul.f32.vlgmr.msrb.gmra.mxu0 %v758_v42  ;;  %v848_v21 = vrot.slane %v758_v42, 1  ;;  %v871_v22 = vrot.slane %v758_v42, 2 }
 0x33b   :  { %v756_v48 = vadd.f32 %v755_v47, %v736_v45  ;;  %866 = vmatmul.f32.vlgmr.msrb.gmra.mxu1 %v848_v21  ;;  %889 = vmatmul.f32.vlgmr.msrb.gmra.mxu2 %v871_v22 }
 0x33d   :  { %v759_v50 = vmax.f32 %v756_v48, 0.0 }
 0x33f   :  { %v939_v53 = vrot.slane %v759_v50, 1  ;;  %v962_v54 = vrot.slane %v759_v50, 2 }
 0x341   :  { %933 = vmatmul.f32.vlgmr.msra.gmra.mxu0 %v759_v50 }
 0x343   :  { %957 = vmatmul.f32.vlgmr.msra.gmra.mxu1 %v939_v53  ;;  %980 = vmatmul.f32.vlgmr.msra.gmra.mxu2 %v962_v54 }
 0x3b6   :  { %v843_v56 = vpop.f32.mrf.mxu0 }
 0x3b7   :  { %v846_v58 = vadd.f32 %v843_v56, %v824_v55 }
 0x3b8   :  { %v867_v57 = vpop.f32.mrf.mxu1 }
 0x3b9   :  { %v870_v59 = vadd.f32 %v867_v57, %v846_v58 }
 0x3be   :  { %v890_v60 = vpop.f32.mrf.mxu2  ;;  %v934_v61 = vpop.f32.mrf.mxu0 }
 0x3bf   :  { %v893_v62 = vadd.f32 %v890_v60, %v870_v59  ;;  %v937_v0 = vadd.f32 %v934_v61, %v824_v55 }
 0x3c0   :  { %v958_v1 = vpop.f32.mrf.mxu1 }
 0x3c1   :  { %v894_v63 = vmax.f32 %v893_v62, 0.0  ;;  %v961_v2 = vadd.f32 %v958_v1, %v937_v0 }
 0x3c3   :  { %911 = vmatmul.f32.vlgmr.msrb.gmra.mxu3 %v894_v63 }
 0x3c6   :  { %v981_v3 = vpop.f32.mrf.mxu2 }
 0x3c7   :  { %v984_v4 = vadd.f32 %v981_v3, %v961_v2 }
 0x3c9   :  { %v985_v5 = vmax.f32 %v984_v4, 0.0 }
 0x3cb   :  { %1002 = vmatmul.f32.vlgmr.msra.gmra.mxu3 %v985_v5 }
 0x446   :  { %v912_v7 = vpop.f32.mrf.mxu3 }
 0x447   :  { %v913_v8 = vadd.f32 %v912_v7, %v825_v6 }
 0x449   :  { %916 = vst.msk [vmem:[#allocation8] sm:$0x1] %vm915_vm6, %v913_v8 }
 0x44e   :  { %v1003_v9 = vpop.f32.mrf.mxu3 }
 0x44f   :  { %v1004_v10 = vadd.f32 %v1003_v9, %v825_v6 }
 0x451   :  { %1006 = vst.msk [vmem:[#allocation8 + $0x1] sm:$0x1] %vm915_vm6, %v1004_v10 }
 0x452   :  { %1017 = dma.vmem_to_hbm [thread:$0]  %s1013_s3, 32, %s1015_s6, [#allocation7]  }
 0x453   :  { %1089 = dma.done.wait [#allocation7], 32  }
 0x454   :  { %1090 = vsyncadd [#allocation7], 4294967264 }
 0x455   :  { %1022 = vsyncpa [#allocation6], 1 }
 0x456   :  { %1023 = vsyncpa [#allocation7], 1 }

</bundles_post_ra>
